<compile_context>
chip_gen: v7x
topology: tpu7x:2x2x1
jax: 0.10.0
libtpu: 0.0.40
codegen_flags: <defaults>
</compile_context>

<pallas_src>
import math

import jax
import jax.numpy as jnp
from jax.experimental import pallas as pl
from jax.experimental.pallas import tpu as pltpu


def _round_up(x, m):
    return (x + m - 1) // m * m


def gru_encoder_kernel(x_ref, wx_ref, wh_ref, bx_ref, bhn_ref, h_out_ref, gx_ref):
    """Whole-sequence GRU encoder in one invocation.

    x_ref   : (T*Bp, Dp)   embedded tokens, time-major, batch padded to Bp
    wx_ref  : (Dp, 3*Hp)   fused input->gate weights  [r | z | n], lane padded
    wh_ref  : (Hp, 3*Hp)   fused hidden->gate weights [r | z | n], lane padded
    bx_ref  : (1, 3*Hp)    fused biases [b_ir+b_hr | b_iz+b_hz | b_in]
    bhn_ref : (1, Hp)      b_hn (kept inside r * (W_hn h + b_hn))
    h_out_ref: (Bp, Hp)    final hidden state h_T
    gx_ref  : (T*Bp, 3*Hp) VMEM scratch: precomputed input projections
    """
    Bp, Hp = h_out_ref.shape
    T = x_ref.shape[0] // Bp
    G3 = wh_ref.shape[1]
    assert G3 == 3 * Hp  # static (trace-time) sanity check

    # Phase 1 (off the serial path): input projection for every timestep as one
    # large MXU matmul, with the fused bias folded in.
    gx_ref[...] = jnp.dot(x_ref[...], wx_ref[...],
                          preferred_element_type=jnp.float32) + bx_ref[...]

    wh = wh_ref[...]      # hoisted: loaded once, reused every step
    bhn = bhn_ref[...]

    # Phase 2: the (inherently serial) recurrence. PyTorch GRU gate math:
    #   r = sigmoid(W_ir x + b_ir + W_hr h + b_hr)
    #   z = sigmoid(W_iz x + b_iz + W_hz h + b_hz)
    #   n = tanh  (W_in x + b_in + r * (W_hn h + b_hn))
    #   h = (1 - z) * n + z * h
    def step(t, h):
        off = pl.multiple_of(t * Bp, 8)                              # aligned sublane slice
        g = gx_ref[pl.ds(off, Bp), :]                                # (Bp, 3*Hp)
        gh = jnp.dot(h, wh, preferred_element_type=jnp.float32)      # (Bp, 3*Hp)
        r = jax.nn.sigmoid(g[:, :Hp] + gh[:, :Hp])
        z = jax.nn.sigmoid(g[:, Hp:2 * Hp] + gh[:, Hp:2 * Hp])
        n = jnp.tanh(g[:, 2 * Hp:] + r * (gh[:, 2 * Hp:] + bhn))
        return n + z * (h - n)                                       # == (1-z)*n + z*h

    h0 = jnp.zeros((Bp, Hp), jnp.float32)                            # torch default h_0 = 0
    h_out_ref[...] = jax.lax.fori_loop(0, T, step, h0, unroll=True)


def encoder_forward(x_tokens, packed):
    """x_tokens: (T, B) int32 token ids (seq-major, like nn.GRU batch_first=False).
    Returns h_n of shape (1, B, H) float32, exactly like the torch Encoder."""
    T, B = x_tokens.shape
    emb = packed["emb"]                     # (V, Dp): pad row zeroed, lane padded
    Dp = emb.shape[1]
    Hp, G3 = packed["wh"].shape
    H = packed["hidden"]
    Bp = _round_up(B, 8)

    # TODO(synk): the embedding lookup stays as jnp.take in the wrapper (data-
    # dependent gather); a DMA-gather kernel is not worth it at these sizes.
    x_emb = jnp.take(emb, x_tokens, axis=0)                 # (T, B, Dp)
    x_emb = jnp.pad(x_emb, ((0, 0), (0, Bp - B), (0, 0)))   # (T, Bp, Dp)
    x2d = x_emb.reshape(T * Bp, Dp)                         # time-major row blocks

    h_pad = pl.pallas_call(
        gru_encoder_kernel,
        out_shape=jax.ShapeDtypeStruct((Bp, Hp), jnp.float32),
        grid_spec=pltpu.PrefetchScalarGridSpec(
            num_scalar_prefetch=0,
            grid=(1,),                               # single invocation; loop runs in-kernel
            in_specs=[
                pl.BlockSpec((T * Bp, Dp), lambda i: (0, 0)),
                pl.BlockSpec((Dp, G3), lambda i: (0, 0)),
                pl.BlockSpec((Hp, G3), lambda i: (0, 0)),
                pl.BlockSpec((1, G3), lambda i: (0, 0)),
                pl.BlockSpec((1, Hp), lambda i: (0, 0)),
            ],
            out_specs=pl.BlockSpec((Bp, Hp), lambda i: (0, 0)),
            scratch_shapes=[pltpu.VMEM((T * Bp, G3), jnp.float32)],
        ),
        compiler_params=pltpu.CompilerParams(
            dimension_semantics=("arbitrary",),
        ),
    )(x2d, packed["wx"], packed["wh"], packed["bx"], packed["bhn"])

    return h_pad[None, :B, :H]                       # (1, B, H) like torch h_n


def init_params(key, vocab_enc, dim_latent_enc, dim_hidden_enc, pad_index):
    """Deterministic synthetic init mirroring torch defaults
    (Embedding ~ N(0,1) with zeroed pad row; GRU weights ~ U(-1/sqrt(H), 1/sqrt(H)))."""
    D, H = dim_latent_enc, dim_hidden_enc
    keys = jax.random.split(key, 13)
    bound = 1.0 / math.sqrt(H)

    emb = jax.random.normal(keys[0], (vocab_enc, D), jnp.float32)
    emb = emb.at[pad_index].set(0.0)                 # padding_idx row = 0

    def u(k, shape):
        return jax.random.uniform(k, shape, jnp.float32, minval=-bound, maxval=bound)

    return {
        "embedding": emb,
        # input->gate weights, stored transposed (D, H) for x @ W
        "w_ir": u(keys[1], (D, H)), "w_iz": u(keys[2], (D, H)), "w_in": u(keys[3], (D, H)),
        # hidden->gate weights, stored transposed (H, H)
        "w_hr": u(keys[4], (H, H)), "w_hz": u(keys[5], (H, H)), "w_hn": u(keys[6], (H, H)),
        # biases kept 2D (1, H)
        "b_ir": u(keys[7], (1, H)), "b_iz": u(keys[8], (1, H)), "b_in": u(keys[9], (1, H)),
        "b_hr": u(keys[10], (1, H)), "b_hz": u(keys[11], (1, H)), "b_hn": u(keys[12], (1, H)),
    }


def pack_params(params, dim_latent_enc, dim_hidden_enc):
    """Fuse per-gate weights into lane-padded [r | z | n] blocks (one-time prep)."""
    D, H = dim_latent_enc, dim_hidden_enc
    Dp = _round_up(D, 128)
    Hp = _round_up(H, 128)          # each gate gets its own 128-lane block
    G3 = 3 * Hp

    emb = jnp.pad(params["embedding"], ((0, 0), (0, Dp - D)))

    wx = jnp.zeros((Dp, G3), jnp.float32)
    wh = jnp.zeros((Hp, G3), jnp.float32)
    bx = jnp.zeros((1, G3), jnp.float32)
    bhn = jnp.zeros((1, Hp), jnp.float32)

    gates = [("w_ir", "w_hr", "b_ir", "b_hr"),
             ("w_iz", "w_hz", "b_iz", "b_hz"),
             ("w_in", "w_hn", "b_in", "b_hn")]
    for g, (wi, whk, bi, bh) in enumerate(gates):
        c = g * Hp
        wx = wx.at[:D, c:c + H].set(params[wi])
        wh = wh.at[:H, c:c + H].set(params[whk])
        if g < 2:
            bx = bx.at[:, c:c + H].set(params[bi] + params[bh])  # fold b_i* + b_h*
        else:
            bx = bx.at[:, c:c + H].set(params[bi])
            bhn = bhn.at[:, :H].set(params[bh])                  # b_hn stays inside r*(...)

    return {"emb": emb, "wx": wx, "wh": wh, "bx": bx, "bhn": bhn, "hidden": H}


if __name__ == "__main__":
    # Small shapes consistent with the module: dim_latent_enc=60 (as in the file),
    # a small vocab, hidden=32, seq=8, batch=2.
    vocab_enc = 50
    dim_latent_enc = 60
    dim_hidden_enc = 32
    pad_index = 0          # Vocabulary.PAD
    T, B = 8, 2

    key = jax.random.PRNGKey(0)
    k_params, k_tokens = jax.random.split(key)

    params = init_params(k_params, vocab_enc, dim_latent_enc, dim_hidden_enc, pad_index)
    packed = pack_params(params, dim_latent_enc, dim_hidden_enc)

    # token ids in [3, vocab) plus some PAD at the tail of one sequence.
    # Note: like torch nn.GRU without pack_padded_sequence, PAD steps still run
    # through the recurrence (only their embedding rows are zero).
    x = jax.random.randint(k_tokens, (T, B), 3, vocab_enc, dtype=jnp.int32)
    x = x.at[-2:, 1].set(pad_index)

    h_n = encoder_forward(x, packed)
    h_n = jax.block_until_ready(h_n)

    assert h_n.shape == (1, B, dim_hidden_enc), h_n.shape
    assert h_n.dtype == jnp.float32
    assert bool(jnp.all(jnp.isfinite(h_n)))
    print("KERNEL_OK")
</pallas_src>

<mosaic_0001>
module attributes {stable_mosaic.version = 11 : i64} {
  func.func @gru_encoder_kernel(%arg0: i32, %arg1: memref<64x128xf32, #tpu.memory_space<vmem>>, %arg2: memref<128x384xf32, #tpu.memory_space<vmem>>, %arg3: memref<128x384xf32, #tpu.memory_space<vmem>>, %arg4: memref<1x384xf32, #tpu.memory_space<vmem>>, %arg5: memref<1x128xf32, #tpu.memory_space<vmem>>, %arg6: memref<8x128xf32, #tpu.memory_space<vmem>>, %arg7: memref<64x384xf32, #tpu.memory_space<vmem>>) attributes {dimension_semantics = [#tpu.dimension_semantics<arbitrary>], iteration_bounds = array<i64: 1>, scalar_prefetch = 0 : i64, scratch_operands = 1 : i64, tpu.core_type = #tpu.core_type<tc>, window_params = [{pipeline_mode = #tpu.pipeline_mode<synchronous>, transform_indices = @transform_0, window_bounds = array<i64: 64, 128>}, {pipeline_mode = #tpu.pipeline_mode<synchronous>, transform_indices = @transform_1, window_bounds = array<i64: 128, 384>}, {pipeline_mode = #tpu.pipeline_mode<synchronous>, transform_indices = @transform_2, window_bounds = array<i64: 128, 384>}, {pipeline_mode = #tpu.pipeline_mode<synchronous>, transform_indices = @transform_3, window_bounds = array<i64: 1, 384>}, {pipeline_mode = #tpu.pipeline_mode<synchronous>, transform_indices = @transform_4, window_bounds = array<i64: 1, 128>}, {pipeline_mode = #tpu.pipeline_mode<synchronous>, transform_indices = @transform_5, window_bounds = array<i64: 8, 128>}]} {
    %c0 = arith.constant 0 : index
    %c0_0 = arith.constant 0 : index
    %0 = vector.load %arg1[%c0, %c0_0] : memref<64x128xf32, #tpu.memory_space<vmem>>, vector<64x128xf32>
    %c0_1 = arith.constant 0 : index
    %c0_2 = arith.constant 0 : index
    %1 = vector.load %arg2[%c0_1, %c0_2] : memref<128x384xf32, #tpu.memory_space<vmem>>, vector<128x384xf32>
    %cst = arith.constant dense<0.000000e+00> : vector<64x384xf32>
    %2 = tpu.matmul %0, %1, %cst {dimension_numbers = #tpu.dot_dimension_numbers<[1], [0], [0], [1], [0, 0, 1, 1], [], []>} : vector<64x128xf32>, vector<128x384xf32>, vector<64x384xf32> -> vector<64x384xf32>
    %c0_3 = arith.constant 0 : index
    %c0_4 = arith.constant 0 : index
    %3 = vector.load %arg4[%c0_3, %c0_4] : memref<1x384xf32, #tpu.memory_space<vmem>>, vector<1x384xf32>
    %4 = vector.broadcast %3 : vector<1x384xf32> to vector<64x384xf32>
    %5 = arith.addf %2, %4 : vector<64x384xf32>
    %c0_5 = arith.constant 0 : index
    %c0_6 = arith.constant 0 : index
    %6 = vector.load %arg7[%c0_5, %c0_6] : memref<64x384xf32, #tpu.memory_space<vmem>>, vector<64x384xf32>
    tpu.vector_store %arg7[%c0_5, %c0_6], %5 {strides = array<i32>} : memref<64x384xf32, #tpu.memory_space<vmem>>, vector<64x384xf32>,
    %c0_7 = arith.constant 0 : index
    %c0_8 = arith.constant 0 : index
    %7 = vector.load %arg3[%c0_7, %c0_8] : memref<128x384xf32, #tpu.memory_space<vmem>>, vector<128x384xf32>
    %c0_9 = arith.constant 0 : index
    %c0_10 = arith.constant 0 : index
    %8 = vector.load %arg5[%c0_9, %c0_10] : memref<1x128xf32, #tpu.memory_space<vmem>>, vector<1x128xf32>
    %cst_11 = arith.constant 0.000000e+00 : f32
    %9 = vector.broadcast %cst_11 : f32 to vector<8x128xf32>
    %c0_i32 = arith.constant 0 : i32
    %c8_i32 = arith.constant 8 : i32
    %10 = arith.muli %c0_i32, %c8_i32 : i32
    %11 = tpu.assume_multiple %10, 8 : i32
    %12 = arith.index_cast %11 : i32 to index
    %c0_12 = arith.constant 0 : index
    %13 = vector.load %arg7[%12, %c0_12] : memref<64x384xf32, #tpu.memory_space<vmem>>, vector<8x384xf32>
    %cst_13 = arith.constant dense<0.000000e+00> : vector<8x384xf32>
    %14 = tpu.matmul %9, %7, %cst_13 {dimension_numbers = #tpu.dot_dimension_numbers<[1], [0], [0], [1], [0, 0, 1, 1], [], []>} : vector<8x128xf32>, vector<128x384xf32>, vector<8x384xf32> -> vector<8x384xf32>
    %15 = vector.extract_strided_slice %13 {offsets = [0, 0], sizes = [8, 128], strides = [1, 1]} : vector<8x384xf32> to vector<8x128xf32>
    %16 = vector.extract_strided_slice %14 {offsets = [0, 0], sizes = [8, 128], strides = [1, 1]} : vector<8x384xf32> to vector<8x128xf32>
    %17 = arith.addf %15, %16 : vector<8x128xf32>
    %18 = arith.negf %17 : vector<8x128xf32>
    %19 = math.exp %18 : vector<8x128xf32>
    %cst_14 = arith.constant 1.000000e+00 : f32
    %20 = vector.broadcast %cst_14 : f32 to vector<8x128xf32>
    %21 = arith.addf %20, %19 : vector<8x128xf32>
    %22 = arith.divf %20, %21 : vector<8x128xf32>
    %23 = vector.extract_strided_slice %13 {offsets = [0, 128], sizes = [8, 128], strides = [1, 1]} : vector<8x384xf32> to vector<8x128xf32>
    %24 = vector.extract_strided_slice %14 {offsets = [0, 128], sizes = [8, 128], strides = [1, 1]} : vector<8x384xf32> to vector<8x128xf32>
    %25 = arith.addf %23, %24 : vector<8x128xf32>
    %26 = arith.negf %25 : vector<8x128xf32>
    %27 = math.exp %26 : vector<8x128xf32>
    %cst_15 = arith.constant 1.000000e+00 : f32
    %28 = vector.broadcast %cst_15 : f32 to vector<8x128xf32>
    %29 = arith.addf %28, %27 : vector<8x128xf32>
    %30 = arith.divf %28, %29 : vector<8x128xf32>
    %31 = vector.extract_strided_slice %13 {offsets = [0, 256], sizes = [8, 128], strides = [1, 1]} : vector<8x384xf32> to vector<8x128xf32>
    %32 = vector.extract_strided_slice %14 {offsets = [0, 256], sizes = [8, 128], strides = [1, 1]} : vector<8x384xf32> to vector<8x128xf32>
    %33 = vector.broadcast %8 : vector<1x128xf32> to vector<8x128xf32>
    %34 = arith.addf %32, %33 : vector<8x128xf32>
    %35 = arith.mulf %22, %34 : vector<8x128xf32>
    %36 = arith.addf %31, %35 : vector<8x128xf32>
    %37 = math.tanh %36 : vector<8x128xf32>
    %38 = arith.subf %9, %37 : vector<8x128xf32>
    %39 = arith.mulf %30, %38 : vector<8x128xf32>
    %40 = arith.addf %37, %39 : vector<8x128xf32>
    %c1_i32 = arith.constant 1 : i32
    %c8_i32_16 = arith.constant 8 : i32
    %41 = arith.muli %c1_i32, %c8_i32_16 : i32
    %42 = tpu.assume_multiple %41, 8 : i32
    %43 = arith.index_cast %42 : i32 to index
    %c0_17 = arith.constant 0 : index
    %44 = vector.load %arg7[%43, %c0_17] : memref<64x384xf32, #tpu.memory_space<vmem>>, vector<8x384xf32>
    %cst_18 = arith.constant dense<0.000000e+00> : vector<8x384xf32>
    %45 = tpu.matmul %40, %7, %cst_18 {dimension_numbers = #tpu.dot_dimension_numbers<[1], [0], [0], [1], [0, 0, 1, 1], [], []>} : vector<8x128xf32>, vector<128x384xf32>, vector<8x384xf32> -> vector<8x384xf32>
    %46 = vector.extract_strided_slice %44 {offsets = [0, 0], sizes = [8, 128], strides = [1, 1]} : vector<8x384xf32> to vector<8x128xf32>
    %47 = vector.extract_strided_slice %45 {offsets = [0, 0], sizes = [8, 128], strides = [1, 1]} : vector<8x384xf32> to vector<8x128xf32>
    %48 = arith.addf %46, %47 : vector<8x128xf32>
    %49 = arith.negf %48 : vector<8x128xf32>
    %50 = math.exp %49 : vector<8x128xf32>
    %cst_19 = arith.constant 1.000000e+00 : f32
    %51 = vector.broadcast %cst_19 : f32 to vector<8x128xf32>
    %52 = arith.addf %51, %50 : vector<8x128xf32>
    %53 = arith.divf %51, %52 : vector<8x128xf32>
    %54 = vector.extract_strided_slice %44 {offsets = [0, 128], sizes = [8, 128], strides = [1, 1]} : vector<8x384xf32> to vector<8x128xf32>
    %55 = vector.extract_strided_slice %45 {offsets = [0, 128], sizes = [8, 128], strides = [1, 1]} : vector<8x384xf32> to vector<8x128xf32>
    %56 = arith.addf %54, %55 : vector<8x128xf32>
    %57 = arith.negf %56 : vector<8x128xf32>
    %58 = math.exp %57 : vector<8x128xf32>
    %cst_20 = arith.constant 1.000000e+00 : f32
    %59 = vector.broadcast %cst_20 : f32 to vector<8x128xf32>
    %60 = arith.addf %59, %58 : vector<8x128xf32>
    %61 = arith.divf %59, %60 : vector<8x128xf32>
    %62 = vector.extract_strided_slice %44 {offsets = [0, 256], sizes = [8, 128], strides = [1, 1]} : vector<8x384xf32> to vector<8x128xf32>
    %63 = vector.extract_strided_slice %45 {offsets = [0, 256], sizes = [8, 128], strides = [1, 1]} : vector<8x384xf32> to vector<8x128xf32>
    %64 = vector.broadcast %8 : vector<1x128xf32> to vector<8x128xf32>
    %65 = arith.addf %63, %64 : vector<8x128xf32>
    %66 = arith.mulf %53, %65 : vector<8x128xf32>
    %67 = arith.addf %62, %66 : vector<8x128xf32>
    %68 = math.tanh %67 : vector<8x128xf32>
    %69 = arith.subf %40, %68 : vector<8x128xf32>
    %70 = arith.mulf %61, %69 : vector<8x128xf32>
    %71 = arith.addf %68, %70 : vector<8x128xf32>
    %c2_i32 = arith.constant 2 : i32
    %c8_i32_21 = arith.constant 8 : i32
    %72 = arith.muli %c2_i32, %c8_i32_21 : i32
    %73 = tpu.assume_multiple %72, 8 : i32
    %74 = arith.index_cast %73 : i32 to index
    %c0_22 = arith.constant 0 : index
    %75 = vector.load %arg7[%74, %c0_22] : memref<64x384xf32, #tpu.memory_space<vmem>>, vector<8x384xf32>
    %cst_23 = arith.constant dense<0.000000e+00> : vector<8x384xf32>
    %76 = tpu.matmul %71, %7, %cst_23 {dimension_numbers = #tpu.dot_dimension_numbers<[1], [0], [0], [1], [0, 0, 1, 1], [], []>} : vector<8x128xf32>, vector<128x384xf32>, vector<8x384xf32> -> vector<8x384xf32>
    %77 = vector.extract_strided_slice %75 {offsets = [0, 0], sizes = [8, 128], strides = [1, 1]} : vector<8x384xf32> to vector<8x128xf32>
    %78 = vector.extract_strided_slice %76 {offsets = [0, 0], sizes = [8, 128], strides = [1, 1]} : vector<8x384xf32> to vector<8x128xf32>
    %79 = arith.addf %77, %78 : vector<8x128xf32>
    %80 = arith.negf %79 : vector<8x128xf32>
    %81 = math.exp %80 : vector<8x128xf32>
    %cst_24 = arith.constant 1.000000e+00 : f32
    %82 = vector.broadcast %cst_24 : f32 to vector<8x128xf32>
    %83 = arith.addf %82, %81 : vector<8x128xf32>
    %84 = arith.divf %82, %83 : vector<8x128xf32>
    %85 = vector.extract_strided_slice %75 {offsets = [0, 128], sizes = [8, 128], strides = [1, 1]} : vector<8x384xf32> to vector<8x128xf32>
    %86 = vector.extract_strided_slice %76 {offsets = [0, 128], sizes = [8, 128], strides = [1, 1]} : vector<8x384xf32> to vector<8x128xf32>
    %87 = arith.addf %85, %86 : vector<8x128xf32>
    %88 = arith.negf %87 : vector<8x128xf32>
    %89 = math.exp %88 : vector<8x128xf32>
    %cst_25 = arith.constant 1.000000e+00 : f32
    %90 = vector.broadcast %cst_25 : f32 to vector<8x128xf32>
    %91 = arith.addf %90, %89 : vector<8x128xf32>
    %92 = arith.divf %90, %91 : vector<8x128xf32>
    %93 = vector.extract_strided_slice %75 {offsets = [0, 256], sizes = [8, 128], strides = [1, 1]} : vector<8x384xf32> to vector<8x128xf32>
    %94 = vector.extract_strided_slice %76 {offsets = [0, 256], sizes = [8, 128], strides = [1, 1]} : vector<8x384xf32> to vector<8x128xf32>
    %95 = vector.broadcast %8 : vector<1x128xf32> to vector<8x128xf32>
    %96 = arith.addf %94, %95 : vector<8x128xf32>
    %97 = arith.mulf %84, %96 : vector<8x128xf32>
    %98 = arith.addf %93, %97 : vector<8x128xf32>
    %99 = math.tanh %98 : vector<8x128xf32>
    %100 = arith.subf %71, %99 : vector<8x128xf32>
    %101 = arith.mulf %92, %100 : vector<8x128xf32>
    %102 = arith.addf %99, %101 : vector<8x128xf32>
    %c3_i32 = arith.constant 3 : i32
    %c8_i32_26 = arith.constant 8 : i32
    %103 = arith.muli %c3_i32, %c8_i32_26 : i32
    %104 = tpu.assume_multiple %103, 8 : i32
    %105 = arith.index_cast %104 : i32 to index
    %c0_27 = arith.constant 0 : index
    %106 = vector.load %arg7[%105, %c0_27] : memref<64x384xf32, #tpu.memory_space<vmem>>, vector<8x384xf32>
    %cst_28 = arith.constant dense<0.000000e+00> : vector<8x384xf32>
    %107 = tpu.matmul %102, %7, %cst_28 {dimension_numbers = #tpu.dot_dimension_numbers<[1], [0], [0], [1], [0, 0, 1, 1], [], []>} : vector<8x128xf32>, vector<128x384xf32>, vector<8x384xf32> -> vector<8x384xf32>
    %108 = vector.extract_strided_slice %106 {offsets = [0, 0], sizes = [8, 128], strides = [1, 1]} : vector<8x384xf32> to vector<8x128xf32>
    %109 = vector.extract_strided_slice %107 {offsets = [0, 0], sizes = [8, 128], strides = [1, 1]} : vector<8x384xf32> to vector<8x128xf32>
    %110 = arith.addf %108, %109 : vector<8x128xf32>
    %111 = arith.negf %110 : vector<8x128xf32>
    %112 = math.exp %111 : vector<8x128xf32>
    %cst_29 = arith.constant 1.000000e+00 : f32
    %113 = vector.broadcast %cst_29 : f32 to vector<8x128xf32>
    %114 = arith.addf %113, %112 : vector<8x128xf32>
    %115 = arith.divf %113, %114 : vector<8x128xf32>
    %116 = vector.extract_strided_slice %106 {offsets = [0, 128], sizes = [8, 128], strides = [1, 1]} : vector<8x384xf32> to vector<8x128xf32>
    %117 = vector.extract_strided_slice %107 {offsets = [0, 128], sizes = [8, 128], strides = [1, 1]} : vector<8x384xf32> to vector<8x128xf32>
    %118 = arith.addf %116, %117 : vector<8x128xf32>
    %119 = arith.negf %118 : vector<8x128xf32>
    %120 = math.exp %119 : vector<8x128xf32>
    %cst_30 = arith.constant 1.000000e+00 : f32
    %121 = vector.broadcast %cst_30 : f32 to vector<8x128xf32>
    %122 = arith.addf %121, %120 : vector<8x128xf32>
    %123 = arith.divf %121, %122 : vector<8x128xf32>
    %124 = vector.extract_strided_slice %106 {offsets = [0, 256], sizes = [8, 128], strides = [1, 1]} : vector<8x384xf32> to vector<8x128xf32>
    %125 = vector.extract_strided_slice %107 {offsets = [0, 256], sizes = [8, 128], strides = [1, 1]} : vector<8x384xf32> to vector<8x128xf32>
    %126 = vector.broadcast %8 : vector<1x128xf32> to vector<8x128xf32>
    %127 = arith.addf %125, %126 : vector<8x128xf32>
    %128 = arith.mulf %115, %127 : vector<8x128xf32>
    %129 = arith.addf %124, %128 : vector<8x128xf32>
    %130 = math.tanh %129 : vector<8x128xf32>
    %131 = arith.subf %102, %130 : vector<8x128xf32>
    %132 = arith.mulf %123, %131 : vector<8x128xf32>
    %133 = arith.addf %130, %132 : vector<8x128xf32>
    %c4_i32 = arith.constant 4 : i32
    %c8_i32_31 = arith.constant 8 : i32
    %134 = arith.muli %c4_i32, %c8_i32_31 : i32
    %135 = tpu.assume_multiple %134, 8 : i32
    %136 = arith.index_cast %135 : i32 to index
    %c0_32 = arith.constant 0 : index
    %137 = vector.load %arg7[%136, %c0_32] : memref<64x384xf32, #tpu.memory_space<vmem>>, vector<8x384xf32>
    %cst_33 = arith.constant dense<0.000000e+00> : vector<8x384xf32>
    %138 = tpu.matmul %133, %7, %cst_33 {dimension_numbers = #tpu.dot_dimension_numbers<[1], [0], [0], [1], [0, 0, 1, 1], [], []>} : vector<8x128xf32>, vector<128x384xf32>, vector<8x384xf32> -> vector<8x384xf32>
    %139 = vector.extract_strided_slice %137 {offsets = [0, 0], sizes = [8, 128], strides = [1, 1]} : vector<8x384xf32> to vector<8x128xf32>
    %140 = vector.extract_strided_slice %138 {offsets = [0, 0], sizes = [8, 128], strides = [1, 1]} : vector<8x384xf32> to vector<8x128xf32>
    %141 = arith.addf %139, %140 : vector<8x128xf32>
    %142 = arith.negf %141 : vector<8x128xf32>
    %143 = math.exp %142 : vector<8x128xf32>
    %cst_34 = arith.constant 1.000000e+00 : f32
    %144 = vector.broadcast %cst_34 : f32 to vector<8x128xf32>
    %145 = arith.addf %144, %143 : vector<8x128xf32>
    %146 = arith.divf %144, %145 : vector<8x128xf32>
    %147 = vector.extract_strided_slice %137 {offsets = [0, 128], sizes = [8, 128], strides = [1, 1]} : vector<8x384xf32> to vector<8x128xf32>
    %148 = vector.extract_strided_slice %138 {offsets = [0, 128], sizes = [8, 128], strides = [1, 1]} : vector<8x384xf32> to vector<8x128xf32>
    %149 = arith.addf %147, %148 : vector<8x128xf32>
    %150 = arith.negf %149 : vector<8x128xf32>
    %151 = math.exp %150 : vector<8x128xf32>
    %cst_35 = arith.constant 1.000000e+00 : f32
    %152 = vector.broadcast %cst_35 : f32 to vector<8x128xf32>
    %153 = arith.addf %152, %151 : vector<8x128xf32>
    %154 = arith.divf %152, %153 : vector<8x128xf32>
    %155 = vector.extract_strided_slice %137 {offsets = [0, 256], sizes = [8, 128], strides = [1, 1]} : vector<8x384xf32> to vector<8x128xf32>
    %156 = vector.extract_strided_slice %138 {offsets = [0, 256], sizes = [8, 128], strides = [1, 1]} : vector<8x384xf32> to vector<8x128xf32>
    %157 = vector.broadcast %8 : vector<1x128xf32> to vector<8x128xf32>
    %158 = arith.addf %156, %157 : vector<8x128xf32>
    %159 = arith.mulf %146, %158 : vector<8x128xf32>
    %160 = arith.addf %155, %159 : vector<8x128xf32>
    %161 = math.tanh %160 : vector<8x128xf32>
    %162 = arith.subf %133, %161 : vector<8x128xf32>
    %163 = arith.mulf %154, %162 : vector<8x128xf32>
    %164 = arith.addf %161, %163 : vector<8x128xf32>
    %c5_i32 = arith.constant 5 : i32
    %c8_i32_36 = arith.constant 8 : i32
    %165 = arith.muli %c5_i32, %c8_i32_36 : i32
    %166 = tpu.assume_multiple %165, 8 : i32
    %167 = arith.index_cast %166 : i32 to index
    %c0_37 = arith.constant 0 : index
    %168 = vector.load %arg7[%167, %c0_37] : memref<64x384xf32, #tpu.memory_space<vmem>>, vector<8x384xf32>
    %cst_38 = arith.constant dense<0.000000e+00> : vector<8x384xf32>
    %169 = tpu.matmul %164, %7, %cst_38 {dimension_numbers = #tpu.dot_dimension_numbers<[1], [0], [0], [1], [0, 0, 1, 1], [], []>} : vector<8x128xf32>, vector<128x384xf32>, vector<8x384xf32> -> vector<8x384xf32>
    %170 = vector.extract_strided_slice %168 {offsets = [0, 0], sizes = [8, 128], strides = [1, 1]} : vector<8x384xf32> to vector<8x128xf32>
    %171 = vector.extract_strided_slice %169 {offsets = [0, 0], sizes = [8, 128], strides = [1, 1]} : vector<8x384xf32> to vector<8x128xf32>
    %172 = arith.addf %170, %171 : vector<8x128xf32>
    %173 = arith.negf %172 : vector<8x128xf32>
    %174 = math.exp %173 : vector<8x128xf32>
    %cst_39 = arith.constant 1.000000e+00 : f32
    %175 = vector.broadcast %cst_39 : f32 to vector<8x128xf32>
    %176 = arith.addf %175, %174 : vector<8x128xf32>
    %177 = arith.divf %175, %176 : vector<8x128xf32>
    %178 = vector.extract_strided_slice %168 {offsets = [0, 128], sizes = [8, 128], strides = [1, 1]} : vector<8x384xf32> to vector<8x128xf32>
    %179 = vector.extract_strided_slice %169 {offsets = [0, 128], sizes = [8, 128], strides = [1, 1]} : vector<8x384xf32> to vector<8x128xf32>
    %180 = arith.addf %178, %179 : vector<8x128xf32>
    %181 = arith.negf %180 : vector<8x128xf32>
    %182 = math.exp %181 : vector<8x128xf32>
    %cst_40 = arith.constant 1.000000e+00 : f32
    %183 = vector.broadcast %cst_40 : f32 to vector<8x128xf32>
    %184 = arith.addf %183, %182 : vector<8x128xf32>
    %185 = arith.divf %183, %184 : vector<8x128xf32>
    %186 = vector.extract_strided_slice %168 {offsets = [0, 256], sizes = [8, 128], strides = [1, 1]} : vector<8x384xf32> to vector<8x128xf32>
    %187 = vector.extract_strided_slice %169 {offsets = [0, 256], sizes = [8, 128], strides = [1, 1]} : vector<8x384xf32> to vector<8x128xf32>
    %188 = vector.broadcast %8 : vector<1x128xf32> to vector<8x128xf32>
    %189 = arith.addf %187, %188 : vector<8x128xf32>
    %190 = arith.mulf %177, %189 : vector<8x128xf32>
    %191 = arith.addf %186, %190 : vector<8x128xf32>
    %192 = math.tanh %191 : vector<8x128xf32>
    %193 = arith.subf %164, %192 : vector<8x128xf32>
    %194 = arith.mulf %185, %193 : vector<8x128xf32>
    %195 = arith.addf %192, %194 : vector<8x128xf32>
    %c6_i32 = arith.constant 6 : i32
    %c8_i32_41 = arith.constant 8 : i32
    %196 = arith.muli %c6_i32, %c8_i32_41 : i32
    %197 = tpu.assume_multiple %196, 8 : i32
    %198 = arith.index_cast %197 : i32 to index
    %c0_42 = arith.constant 0 : index
    %199 = vector.load %arg7[%198, %c0_42] : memref<64x384xf32, #tpu.memory_space<vmem>>, vector<8x384xf32>
    %cst_43 = arith.constant dense<0.000000e+00> : vector<8x384xf32>
    %200 = tpu.matmul %195, %7, %cst_43 {dimension_numbers = #tpu.dot_dimension_numbers<[1], [0], [0], [1], [0, 0, 1, 1], [], []>} : vector<8x128xf32>, vector<128x384xf32>, vector<8x384xf32> -> vector<8x384xf32>
    %201 = vector.extract_strided_slice %199 {offsets = [0, 0], sizes = [8, 128], strides = [1, 1]} : vector<8x384xf32> to vector<8x128xf32>
    %202 = vector.extract_strided_slice %200 {offsets = [0, 0], sizes = [8, 128], strides = [1, 1]} : vector<8x384xf32> to vector<8x128xf32>
    %203 = arith.addf %201, %202 : vector<8x128xf32>
    %204 = arith.negf %203 : vector<8x128xf32>
    %205 = math.exp %204 : vector<8x128xf32>
    %cst_44 = arith.constant 1.000000e+00 : f32
    %206 = vector.broadcast %cst_44 : f32 to vector<8x128xf32>
    %207 = arith.addf %206, %205 : vector<8x128xf32>
    %208 = arith.divf %206, %207 : vector<8x128xf32>
    %209 = vector.extract_strided_slice %199 {offsets = [0, 128], sizes = [8, 128], strides = [1, 1]} : vector<8x384xf32> to vector<8x128xf32>
    %210 = vector.extract_strided_slice %200 {offsets = [0, 128], sizes = [8, 128], strides = [1, 1]} : vector<8x384xf32> to vector<8x128xf32>
    %211 = arith.addf %209, %210 : vector<8x128xf32>
    %212 = arith.negf %211 : vector<8x128xf32>
    %213 = math.exp %212 : vector<8x128xf32>
    %cst_45 = arith.constant 1.000000e+00 : f32
    %214 = vector.broadcast %cst_45 : f32 to vector<8x128xf32>
    %215 = arith.addf %214, %213 : vector<8x128xf32>
    %216 = arith.divf %214, %215 : vector<8x128xf32>
    %217 = vector.extract_strided_slice %199 {offsets = [0, 256], sizes = [8, 128], strides = [1, 1]} : vector<8x384xf32> to vector<8x128xf32>
    %218 = vector.extract_strided_slice %200 {offsets = [0, 256], sizes = [8, 128], strides = [1, 1]} : vector<8x384xf32> to vector<8x128xf32>
    %219 = vector.broadcast %8 : vector<1x128xf32> to vector<8x128xf32>
    %220 = arith.addf %218, %219 : vector<8x128xf32>
    %221 = arith.mulf %208, %220 : vector<8x128xf32>
    %222 = arith.addf %217, %221 : vector<8x128xf32>
    %223 = math.tanh %222 : vector<8x128xf32>
    %224 = arith.subf %195, %223 : vector<8x128xf32>
    %225 = arith.mulf %216, %224 : vector<8x128xf32>
    %226 = arith.addf %223, %225 : vector<8x128xf32>
    %c7_i32 = arith.constant 7 : i32
    %c8_i32_46 = arith.constant 8 : i32
    %227 = arith.muli %c7_i32, %c8_i32_46 : i32
    %228 = tpu.assume_multiple %227, 8 : i32
    %229 = arith.index_cast %228 : i32 to index
    %c0_47 = arith.constant 0 : index
    %230 = vector.load %arg7[%229, %c0_47] : memref<64x384xf32, #tpu.memory_space<vmem>>, vector<8x384xf32>
    %cst_48 = arith.constant dense<0.000000e+00> : vector<8x384xf32>
    %231 = tpu.matmul %226, %7, %cst_48 {dimension_numbers = #tpu.dot_dimension_numbers<[1], [0], [0], [1], [0, 0, 1, 1], [], []>} : vector<8x128xf32>, vector<128x384xf32>, vector<8x384xf32> -> vector<8x384xf32>
    %232 = vector.extract_strided_slice %230 {offsets = [0, 0], sizes = [8, 128], strides = [1, 1]} : vector<8x384xf32> to vector<8x128xf32>
    %233 = vector.extract_strided_slice %231 {offsets = [0, 0], sizes = [8, 128], strides = [1, 1]} : vector<8x384xf32> to vector<8x128xf32>
    %234 = arith.addf %232, %233 : vector<8x128xf32>
    %235 = arith.negf %234 : vector<8x128xf32>
    %236 = math.exp %235 : vector<8x128xf32>
    %cst_49 = arith.constant 1.000000e+00 : f32
    %237 = vector.broadcast %cst_49 : f32 to vector<8x128xf32>
    %238 = arith.addf %237, %236 : vector<8x128xf32>
    %239 = arith.divf %237, %238 : vector<8x128xf32>
    %240 = vector.extract_strided_slice %230 {offsets = [0, 128], sizes = [8, 128], strides = [1, 1]} : vector<8x384xf32> to vector<8x128xf32>
    %241 = vector.extract_strided_slice %231 {offsets = [0, 128], sizes = [8, 128], strides = [1, 1]} : vector<8x384xf32> to vector<8x128xf32>
    %242 = arith.addf %240, %241 : vector<8x128xf32>
    %243 = arith.negf %242 : vector<8x128xf32>
    %244 = math.exp %243 : vector<8x128xf32>
    %cst_50 = arith.constant 1.000000e+00 : f32
    %245 = vector.broadcast %cst_50 : f32 to vector<8x128xf32>
    %246 = arith.addf %245, %244 : vector<8x128xf32>
    %247 = arith.divf %245, %246 : vector<8x128xf32>
    %248 = vector.extract_strided_slice %230 {offsets = [0, 256], sizes = [8, 128], strides = [1, 1]} : vector<8x384xf32> to vector<8x128xf32>
    %249 = vector.extract_strided_slice %231 {offsets = [0, 256], sizes = [8, 128], strides = [1, 1]} : vector<8x384xf32> to vector<8x128xf32>
    %250 = vector.broadcast %8 : vector<1x128xf32> to vector<8x128xf32>
    %251 = arith.addf %249, %250 : vector<8x128xf32>
    %252 = arith.mulf %239, %251 : vector<8x128xf32>
    %253 = arith.addf %248, %252 : vector<8x128xf32>
    %254 = math.tanh %253 : vector<8x128xf32>
    %255 = arith.subf %226, %254 : vector<8x128xf32>
    %256 = arith.mulf %247, %255 : vector<8x128xf32>
    %257 = arith.addf %254, %256 : vector<8x128xf32>
    %c8_i32_51 = arith.constant 8 : i32
    %c0_52 = arith.constant 0 : index
    %c0_53 = arith.constant 0 : index
    %258 = vector.load %arg6[%c0_52, %c0_53] : memref<8x128xf32, #tpu.memory_space<vmem>>, vector<8x128xf32>
    tpu.vector_store %arg6[%c0_52, %c0_53], %257 {strides = array<i32>} : memref<8x128xf32, #tpu.memory_space<vmem>>, vector<8x128xf32>,
    return
  }
  func.func @transform_0(%arg0: i32) -> (i32, i32) {
    %c0_i32 = arith.constant 0 : i32
    %c0_i32_0 = arith.constant 0 : i32
    %c0_i32_1 = arith.constant 0 : i32
    return %c0_i32, %c0_i32_0 : i32, i32
  }
  func.func @transform_1(%arg0: i32) -> (i32, i32) {
    %c0_i32 = arith.constant 0 : i32
    %c0_i32_0 = arith.constant 0 : i32
    %c0_i32_1 = arith.constant 0 : i32
    return %c0_i32, %c0_i32_0 : i32, i32
  }
  func.func @transform_2(%arg0: i32) -> (i32, i32) {
    %c0_i32 = arith.constant 0 : i32
    %c0_i32_0 = arith.constant 0 : i32
    %c0_i32_1 = arith.constant 0 : i32
    return %c0_i32, %c0_i32_0 : i32, i32
  }
  func.func @transform_3(%arg0: i32) -> (i32, i32) {
    %c0_i32 = arith.constant 0 : i32
    %c0_i32_0 = arith.constant 0 : i32
    %c0_i32_1 = arith.constant 0 : i32
    return %c0_i32, %c0_i32_0 : i32, i32
  }
  func.func @transform_4(%arg0: i32) -> (i32, i32) {
    %c0_i32 = arith.constant 0 : i32
    %c0_i32_0 = arith.constant 0 : i32
    %c0_i32_1 = arith.constant 0 : i32
    return %c0_i32, %c0_i32_0 : i32, i32
  }
  func.func @transform_5(%arg0: i32) -> (i32, i32) {
    %c0_i32 = arith.constant 0 : i32
    %c0_i32_0 = arith.constant 0 : i32
    %c0_i32_1 = arith.constant 0 : i32
    return %c0_i32, %c0_i32_0 : i32, i32
  }
}

</mosaic_0001>

<bundles_post_ra>
// kernel: tpu_custom_call.1
= control target key start
LH: loop header
LB: loop body
LE: loop exit
PB: predicated region body
PF: predicated region fallthrough
CT: control target
= control target key end

     0   :  { %10 = vsyncpa [#allocation4], 0  ;;  %s3524_s0 = inlined_call_operand.hbm [shape: f32[64,128], index: 0, kind: input, shape index: {}]   ;;  %s3525_s1 = inlined_call_operand.hbm [shape: f32[128,384], index: 1, kind: input, shape index: {}]   ;;  %s3526_s2 = inlined_call_operand.hbm [shape: f32[128,384], index: 2, kind: input, shape index: {}]   ;;  %s3527_s3 = inlined_call_operand.vmem [shape: f32[1,384], index: 3, kind: input, shape index: {}]   ;;  %s3528_s4 = inlined_call_operand.vmem [shape: f32[1,128], index: 4, kind: input, shape index: {}]   ;;  %s3529_s5 = inlined_call_operand.hbm [shape: f32[8,128], index: 5, kind: output, shape index: {}]  }
   0x1   :  { %11 = vsyncpa [#allocation7], 0 }
   0x2   :  { %12 = vsyncpa [#allocation5], 0  ;;  %s3030_s18 = smov [#allocation6]   ;;  %s2936_s22 = scalar_lea.hbm %s3525_s1, 6144 }
   0x3   :  { %s30_s19 = sshll.u32 %s3030_s18, 4  ;;  %p2937_p0 = scmp.ne.s32.totalorder %s3525_s1, %s2936_s22  ;;  %s31_s19 = int_to_ptr.vmem [resolvable:$true] %s30_s19 }
   0x4   :  { %p2940_p1 = scmp.lt.u32.totalorder %s2936_s22, %s3525_s1 }
   0x6   :  { %p2942_p2 = pnand %p2940_p1, %p2937_p0 }
   0x8   :  { %2945 = shalt.err (!%p2942_p2)
}
   0x9   :  { %s2946_s27 = scalar_lea.vmem %s31_s19, 6144  ;;  %p2951_p4 = scmp.lt.s32.totalorder %s31_s19, %s31_s19 }
   0xa   :  { %p2947_p3 = scmp.ne.s32.totalorder %s31_s19, %s2946_s27  ;;  %p2952_p5 = scmp.lt.s32.totalorder %s2946_s27, %s2946_s27 }
   0xc   :  { %p2953_p6 = por %p2952_p5, %p2951_p4 }
   0xe   :  { %p2954_p7 = pnand %p2953_p6, %p2947_p3 }
  0x10   :  { %2957 = shalt.err (!%p2954_p7)
}
  0x11   :  { %s3031_s28 = smov 384   ;;  %s3032_s29 = smov 24  }
  0x12   :  { %36 = dma.hbm_to_vmem [thread:$0]  %s3525_s1, 6144, %s31_s19, [#allocation7], %s3031_s28, %s3031_s28, %s3032_s29  }
  0x13   :  { %s3033_s7 = smov [#allocation3]   ;;  %s2958_s11 = scalar_lea.hbm %s3524_s0, 1024 }
  0x14   :  { %s18_s8 = sshll.u32 %s3033_s7, 4  ;;  %p2959_p8 = scmp.ne.s32.totalorder %s3524_s0, %s2958_s11  ;;  %s19_s8 = int_to_ptr.vmem [resolvable:$true] %s18_s8 }
  0x15   :  { %p2962_p9 = scmp.lt.u32.totalorder %s2958_s11, %s3524_s0 }
  0x17   :  { %p2964_p10 = pnand %p2962_p9, %p2959_p8 }
  0x19   :  { %2967 = shalt.err (!%p2964_p10)
}
  0x1a   :  { %s2968_s16 = scalar_lea.vmem %s19_s8, 1024  ;;  %p2973_p12 = scmp.lt.s32.totalorder %s19_s8, %s19_s8 }
  0x1b   :  { %p2969_p11 = scmp.ne.s32.totalorder %s19_s8, %s2968_s16  ;;  %p2974_p13 = scmp.lt.s32.totalorder %s2968_s16, %s2968_s16 }
  0x1d   :  { %p2975_p0 = por %p2974_p13, %p2973_p12 }
  0x1f   :  { %p2976_p1 = pnand %p2975_p0, %p2969_p11 }
  0x21   :  { %2979 = shalt.err (!%p2976_p1)
}
  0x22   :  { %s3034_s1 = smov 128   ;;  %s3035_s17 = smov 8  }
  0x23   :  { %24 = dma.hbm_to_vmem [thread:$0]  %s3524_s0, 1024, %s19_s8, [#allocation4], %s3034_s1, %s3034_s1, %s3035_s17  }
  0x24   :  { %s3036_s20 = smov [#allocation8]   ;;  %s2980_s24 = scalar_lea.hbm %s3526_s2, 6144 }
  0x25   :  { %s42_s21 = sshll.u32 %s3036_s20, 4  ;;  %p2981_p2 = scmp.ne.s32.totalorder %s3526_s2, %s2980_s24  ;;  %s43_s21 = int_to_ptr.vmem [resolvable:$true] %s42_s21 }
  0x26   :  { %p2984_p3 = scmp.lt.u32.totalorder %s2980_s24, %s3526_s2 }
  0x28   :  { %p2986_p4 = pnand %p2984_p3, %p2981_p2 }
  0x2a   :  { %2989 = shalt.err (!%p2986_p4)
}
  0x2b   :  { %s2990_s6 = scalar_lea.vmem %s43_s21, 6144  ;;  %p2995_p6 = scmp.lt.s32.totalorder %s43_s21, %s43_s21 }
  0x2c   :  { %p2991_p5 = scmp.ne.s32.totalorder %s43_s21, %s2990_s6  ;;  %p2996_p7 = scmp.lt.s32.totalorder %s2990_s6, %s2990_s6 }
  0x2e   :  { %p2997_p8 = por %p2996_p7, %p2995_p6 }
  0x30   :  { %p2998_p9 = pnand %p2997_p8, %p2991_p5 }
  0x32   :  { %3001 = shalt.err (!%p2998_p9)
}
  0x33   :  { %48 = dma.hbm_to_vmem [thread:$0]  %s3526_s2, 6144, %s43_s21, [#allocation7], %s3031_s28, %s3031_s28, %s3032_s29  }
  0x34   :  { %3024 = dma.done.wait [#allocation4], 1024  }
  0x35   :  { %3025 = vsyncadd [#allocation4], 4294966272 }
  0x36   :  { %3026 = dma.done.wait [#allocation7], 12288  }
  0x37   :  { %3027 = vsyncadd [#allocation7], 4294955008  ;;  %v3037_v0 = vmov 0.0   ;;  %v71_v1 = vld [vmem:[#allocation6 + $0x8] sm:$0xff]  ;;  %v74_v2 = vld [vmem:[#allocation6 + $0x20] sm:$0xff]  ;;  %vm3039_vm0 = vmmov 0  }
  0x38   :  { %199 = vmatprep.mubr.f32.mxu0 %v3037_v0  ;;  %v70_v3 = vld [vmem:[#allocation6] sm:$0xff]  ;;  %v2301_v4 = vpack.c.bf16 %v74_v2, %v71_v1  ;;  %v73_v5 = vld [vmem:[#allocation6 + $0x18] sm:$0xff]  ;;  %v80_v7 = vld [vmem:[#allocation6 + $0x50] sm:$0xff] }
  0x39   :  { %v77_v6 = vld [vmem:[#allocation6 + $0x38] sm:$0xff]  ;;  %v2303_v8 = vpack.c.bf16 %v73_v5, %v70_v3  ;;  %v76_v10 = vld [vmem:[#allocation6 + $0x30] sm:$0xff]  ;;  %v79_v11 = vld [vmem:[#allocation6 + $0x48] sm:$0xff] }
  0x3a   :  { %v2305_v9 = vpack.c.bf16 %v80_v7, %v77_v6  ;;  %v83_v12 = vld [vmem:[#allocation6 + $0x68] sm:$0xff]  ;;  %2302 = vmatprep.subr.bf16.mxu0 %v2301_v4  ;;  %v86_v13 = vld [vmem:[#allocation6 + $0x80] sm:$0xff]  ;;  %v2307_v14 = vpack.c.bf16 %v79_v11, %v76_v10  ;;  %v85_v17 = vld [vmem:[#allocation6 + $0x78] sm:$0xff] }
  0x3b   :  { %2304 = vmatpush1.bf16.msra.mxu0 %v2303_v8  ;;  %v2309_v15 = vpack.c.bf16 %v86_v13, %v83_v12  ;;  %v82_v16 = vld [vmem:[#allocation6 + $0x60] sm:$0xff]  ;;  %v89_v18 = vld [vmem:[#allocation6 + $0x98] sm:$0xff]  ;;  %v92_v19 = vld [vmem:[#allocation6 + $0xb0] sm:$0xff] }
  0x3c   :  { %2306 = vmatprep.subr.bf16.mxu0 %v2305_v9  ;;  %v2311_v20 = vpack.c.bf16 %v85_v17, %v82_v16  ;;  %v88_v21 = vld [vmem:[#allocation6 + $0x90] sm:$0xff]  ;;  %v2313_v22 = vpack.c.bf16 %v92_v19, %v89_v18  ;;  %v91_v23 = vld [vmem:[#allocation6 + $0xa8] sm:$0xff]  ;;  %v98_v27 = vld [vmem:[#allocation6 + $0xe0] sm:$0xff] }
  0x3d   :  { %v72_v24 = vld [vmem:[#allocation6 + $0x10] sm:$0xff]  ;;  %v75_v25 = vld [vmem:[#allocation6 + $0x28] sm:$0xff]  ;;  %v78_v29 = vld [vmem:[#allocation6 + $0x40] sm:$0xff]  ;;  %v2315_v31 = vpack.c.bf16 %v91_v23, %v88_v21 }
  0x3e   :  { %v95_v26 = vld [vmem:[#allocation6 + $0xc8] sm:$0xff]  ;;  %v2333_v28 = vpack.c.bf16 %v75_v25, %v72_v24  ;;  %v81_v30 = vld [vmem:[#allocation6 + $0x58] sm:$0xff]  ;;  %v94_v32 = vld [vmem:[#allocation6 + $0xc0] sm:$0xff] }
  0x3f   :  { %2308 = vmatpush1.bf16.msra.mxu0 %v2307_v14  ;;  %v2337_v33 = vpack.c.bf16 %v81_v30, %v78_v29  ;;  %v2317_v34 = vpack.c.bf16 %v98_v27, %v95_v26  ;;  %v97_v35 = vld [vmem:[#allocation6 + $0xd8] sm:$0xff]  ;;  %v3114_v36 = vld [vmem:[#allocation3] sm:$0xff]  ;;  %v84_v37 = vld [vmem:[#allocation6 + $0x70] sm:$0xff] }
  0x40   :  { %2310 = vmatprep.subr.bf16.mxu0 %v2309_v15  ;;  %2334 = vmatprep.subr.bf16.mxu1 %v2333_v28  ;;  %v101_v38 = vld [vmem:[#allocation6 + $0xf8] sm:$0xff]  ;;  %v104_v39 = vld [vmem:[#allocation6 + $0x110] sm:$0xff]  ;;  %v87_v40 = vld [vmem:[#allocation6 + $0x88] sm:$0xff]  ;;  %v2319_v42 = vpack.c.bf16 %v97_v35, %v94_v32 }
  0x41   :  { %2336 = vmatpush3.bf16.msra.mxu1 %v2333_v28  ;;  %2009 = vmatprep.mubr.f32.mxu1 %v3114_v36  ;;  %v2341_v41 = vpack.c.bf16 %v87_v40, %v84_v37  ;;  %v90_v43 = vld [vmem:[#allocation6 + $0xa0] sm:$0xff]  ;;  %v93_v44 = vld [vmem:[#allocation6 + $0xb8] sm:$0xff]  ;;  %v2321_v45 = vpack.c.bf16 %v104_v39, %v101_v38  ;;  %v100_v46 = vld [vmem:[#allocation6 + $0xf0] sm:$0xff]  ;;  %v3038_v40 = vmov 0.0|0.0  }
  0x42   :  { %2338 = vmatprep.subr.bf16.mxu1 %v2337_v33  ;;  %v103_v47 = vld [vmem:[#allocation6 + $0x108] sm:$0xff]  ;;  %v110_v49 = vld [vmem:[#allocation6 + $0x140] sm:$0xff]  ;;  %v2345_v50 = vpack.c.bf16 %v93_v44, %v90_v43  ;;  %v96_v51 = vld [vmem:[#allocation6 + $0xd0] sm:$0xff] }
  0x43   :  { %2312 = vmatpush1.bf16.msra.mxu0 %v2311_v20  ;;  %v107_v48 = vld [vmem:[#allocation6 + $0x128] sm:$0xff]  ;;  %v2323_v53 = vpack.c.bf16 %v103_v47, %v100_v46  ;;  %v106_v55 = vld [vmem:[#allocation6 + $0x120] sm:$0xff]  ;;  %v109_v56 = vld [vmem:[#allocation6 + $0x138] sm:$0xff] }
  0x44   :  { %2314 = vmatprep.subr.bf16.mxu0 %v2313_v22  ;;  %v99_v52 = vld [vmem:[#allocation6 + $0xe8] sm:$0xff]  ;;  %v2325_v54 = vpack.c.bf16 %v110_v49, %v107_v48  ;;  %v113_v57 = vld [vmem:[#allocation6 + $0x158] sm:$0xff]  ;;  %v116_v58 = vld [vmem:[#allocation6 + $0x170] sm:$0xff]  ;;  %v2327_v62 = vpack.c.bf16 %v109_v56, %v106_v55 }
  0x45   :  { %2340 = vmatpush3.bf16.msra.mxu1 %v2337_v33  ;;  %v2349_v59 = vpack.c.bf16 %v99_v52, %v96_v51  ;;  %v102_v60 = vld [vmem:[#allocation6 + $0x100] sm:$0xff]  ;;  %v105_v61 = vld [vmem:[#allocation6 + $0x118] sm:$0xff]  ;;  %v2329_v63 = vpack.c.bf16 %v116_v58, %v113_v57  ;;  %v112_v1 = vld [vmem:[#allocation6 + $0x150] sm:$0xff] }
  0x46   :  { %2342 = vmatprep.subr.bf16.mxu1 %v2341_v41  ;;  %v115_v2 = vld [vmem:[#allocation6 + $0x168] sm:$0xff]  ;;  %v381_v4 = vld [vmem:[#allocation8 + $0x20] sm:$0xff]  ;;  %v2353_v5 = vpack.c.bf16 %v105_v61, %v102_v60  ;;  %v108_v6 = vld [vmem:[#allocation6 + $0x130] sm:$0xff] }
  0x47   :  { %2316 = vmatpush1.bf16.msra.mxu0 %v2315_v31  ;;  %v378_v3 = vld [vmem:[#allocation8 + $0x8] sm:$0xff]  ;;  %v2331_v8 = vpack.c.bf16 %v115_v2, %v112_v1  ;;  %v377_v10 = vld [vmem:[#allocation8] sm:$0xff]  ;;  %v380_v11 = vld [vmem:[#allocation8 + $0x18] sm:$0xff] }
  0x48   :  { %2318 = vmatprep.subr.bf16.mxu0 %v2317_v34  ;;  %v111_v7 = vld [vmem:[#allocation6 + $0x148] sm:$0xff]  ;;  %v3117_v9 = vpack.c.bf16 %v381_v4, %v378_v3  ;;  %v384_v12 = vld [vmem:[#allocation8 + $0x38] sm:$0xff]  ;;  %v387_v13 = vld [vmem:[#allocation8 + $0x50] sm:$0xff]  ;;  %v3119_v17 = vpack.c.bf16 %v380_v11, %v377_v10 }
  0x49   :  { %2344 = vmatpush3.bf16.msra.mxu1 %v2341_v41  ;;  %v2357_v14 = vpack.c.bf16 %v111_v7, %v108_v6  ;;  %v114_v15 = vld [vmem:[#allocation6 + $0x160] sm:$0xff]  ;;  %v117_v16 = vld [vmem:[#allocation6 + $0x178] sm:$0xff]  ;;  %v3122_v18 = vpack.c.bf16 %v387_v13, %v384_v12  ;;  %v383_v19 = vld [vmem:[#allocation8 + $0x30] sm:$0xff] }
  0x4a   :  { %2346 = vmatprep.subr.bf16.mxu1 %v2345_v50  ;;  %v386_v20 = vld [vmem:[#allocation8 + $0x48] sm:$0xff]  ;;  %v393_v22 = vld [vmem:[#allocation8 + $0x80] sm:$0xff]  ;;  %v2361_v23 = vpack.c.bf16 %v117_v16, %v114_v15  ;;  %v392_v28 = vld [vmem:[#allocation8 + $0x78] sm:$0xff] }
  0x4b   :  { %2320 = vmatpush1.bf16.msra.mxu0 %v2319_v42  ;;  %v390_v21 = vld [vmem:[#allocation8 + $0x68] sm:$0xff]  ;;  %v3127_v25 = vpack.c.bf16 %v386_v20, %v383_v19  ;;  %v389_v27 = vld [vmem:[#allocation8 + $0x60] sm:$0xff]  ;;  %v396_v29 = vld [vmem:[#allocation8 + $0x98] sm:$0xff] }
  0x4c   :  { %2322 = vmatprep.subr.bf16.mxu0 %v2321_v45  ;;  %v63_v24 = vld [vmem:[#allocation3 + $0x8] sm:$0xff]  ;;  %v3130_v26 = vpack.c.bf16 %v393_v22, %v390_v21  ;;  %v399_v30 = vld [vmem:[#allocation8 + $0xb0] sm:$0xff]  ;;  %v3134_v34 = vpack.c.bf16 %v392_v28, %v389_v27  ;;  %v405_v39 = vld [vmem:[#allocation8 + $0xe0] sm:$0xff] }
  0x4d   :  { %2348 = vmatpush3.bf16.msra.mxu1 %v2345_v50  ;;  %v379_v31 = vld [vmem:[#allocation8 + $0x10] sm:$0xff]  ;;  %v382_v32 = vld [vmem:[#allocation8 + $0x28] sm:$0xff]  ;;  %v3137_v35 = vpack.c.bf16 %v399_v30, %v396_v29  ;;  %v385_v42 = vld [vmem:[#allocation8 + $0x40] sm:$0xff] }
  0x4e   :  { %2350 = vmatprep.subr.bf16.mxu1 %v2349_v59  ;;  %v64_v33 = vld [vmem:[#allocation3 + $0x10] sm:$0xff]  ;;  %v398_v37 = vld [vmem:[#allocation8 + $0xa8] sm:$0xff]  ;;  %v3140_v41 = vpack.c.bf16 %v382_v32, %v379_v31  ;;  %v388_v43 = vld [vmem:[#allocation8 + $0x58] sm:$0xff] }
  0x4f   :  { %2324 = vmatpush1.bf16.msra.mxu0 %v2323_v53  ;;  %v402_v38 = vld [vmem:[#allocation8 + $0xc8] sm:$0xff]  ;;  %v65_v44 = vld [vmem:[#allocation3 + $0x18] sm:$0xff]  ;;  %v401_v47 = vld [vmem:[#allocation8 + $0xc0] sm:$0xff]  ;;  %v3150_v51 = vpack.c.bf16 %v388_v43, %v385_v42 }
  0x50   :  { %2326 = vmatprep.subr.bf16.mxu0 %v2325_v54  ;;  %v3147_v46 = vpack.c.bf16 %v405_v39, %v402_v38  ;;  %v404_v48 = vld [vmem:[#allocation8 + $0xd8] sm:$0xff]  ;;  %v411_v50 = vld [vmem:[#allocation8 + $0x110] sm:$0xff]  ;;  %v394_v53 = vld [vmem:[#allocation8 + $0x88] sm:$0xff] }
  0x51   :  { %2352 = vmatpush3.bf16.msra.mxu1 %v2349_v59  ;;  %v408_v49 = vld [vmem:[#allocation8 + $0xf8] sm:$0xff]  ;;  %v391_v52 = vld [vmem:[#allocation8 + $0x70] sm:$0xff]  ;;  %v66_v54 = vld [vmem:[#allocation3 + $0x20] sm:$0xff]  ;;  %v3155_v55 = vpack.c.bf16 %v404_v48, %v401_v47 }
  0x52   :  { %2354 = vmatprep.subr.bf16.mxu1 %v2353_v5  ;;  %v3158_v56 = vpack.c.bf16 %v411_v50, %v408_v49  ;;  %v407_v57 = vld [vmem:[#allocation8 + $0xf0] sm:$0xff]  ;;  %v410_v58 = vld [vmem:[#allocation8 + $0x108] sm:$0xff]  ;;  %v417_v60 = vld [vmem:[#allocation8 + $0x140] sm:$0xff]  ;;  %v3161_v61 = vpack.c.bf16 %v394_v53, %v391_v52 }
  0x53   :  { %2328 = vmatpush1.bf16.msra.mxu0 %v2327_v62  ;;  %v414_v59 = vld [vmem:[#allocation8 + $0x128] sm:$0xff]  ;;  %v397_v62 = vld [vmem:[#allocation8 + $0xa0] sm:$0xff]  ;;  %v3166_v2 = vpack.c.bf16 %v410_v58, %v407_v57  ;;  %v68_v3 = vld [vmem:[#allocation3 + $0x30] sm:$0xff] }
  0x54   :  { %2330 = vmatprep.subr.bf16.mxu0 %v2329_v63  ;;  %v400_v63 = vld [vmem:[#allocation8 + $0xb8] sm:$0xff]  ;;  %v67_v1 = vld [vmem:[#allocation3 + $0x28] sm:$0xff]  ;;  %v3169_v4 = vpack.c.bf16 %v417_v60, %v414_v59  ;;  %v403_v11 = vld [vmem:[#allocation8 + $0xd0] sm:$0xff] }
  0x55   :  { %2356 = vmatpush3.bf16.msra.mxu1 %v2353_v5  ;;  %v413_v5 = vld [vmem:[#allocation8 + $0x120] sm:$0xff]  ;;  %v416_v6 = vld [vmem:[#allocation8 + $0x138] sm:$0xff]  ;;  %v3172_v10 = vpack.c.bf16 %v400_v63, %v397_v62  ;;  %v406_v12 = vld [vmem:[#allocation8 + $0xe8] sm:$0xff] }
  0x56   :  { %2358 = vmatprep.subr.bf16.mxu1 %v2357_v14  ;;  %v420_v7 = vld [vmem:[#allocation8 + $0x158] sm:$0xff]  ;;  %v3177_v13 = vpack.c.bf16 %v416_v6, %v413_v5  ;;  %v419_v16 = vld [vmem:[#allocation8 + $0x150] sm:$0xff]  ;;  %v422_v19 = vld [vmem:[#allocation8 + $0x168] sm:$0xff]  ;;  %v3183_v20 = vpack.c.bf16 %v406_v12, %v403_v11 }
  0x57   :  { %2332 = vmatpush1.bf16.msra.mxu0 %v2331_v8  ;;  %v423_v8 = vld [vmem:[#allocation8 + $0x170] sm:$0xff]  ;;  %v409_v21 = vld [vmem:[#allocation8 + $0x100] sm:$0xff]  ;;  %v412_v22 = vld [vmem:[#allocation8 + $0x118] sm:$0xff] }
  0x58   :  { %2366 = vmatprep.subr.bf16.mxu0 %v3117_v9  ;;  %v3180_v15 = vpack.c.bf16 %v423_v8, %v420_v7  ;;  %v415_v27 = vld [vmem:[#allocation8 + $0x130] sm:$0xff]  ;;  %v418_v28 = vld [vmem:[#allocation8 + $0x148] sm:$0xff]  ;;  %v421_v30 = vld [vmem:[#allocation8 + $0x160] sm:$0xff] }
  0x59   :  { %2360 = vmatpush3.bf16.msra.mxu1 %v2357_v14  ;;  %v69_v14 = vld [vmem:[#allocation3 + $0x38] sm:$0xff]  ;;  %v3201_v29 = vpack.c.bf16 %v418_v28, %v415_v27  ;;  %v118_v38 = vld [vmem:[%s3527_s3] sm:$0x7] }
  0x5a   :  { %200 = vmatmul.mubr.f32.vlgmr.msra.gmra.mrb[0].mxu0 %v3114_v36  ;;  %2362 = vmatprep.subr.bf16.mxu1 %v2361_v23  ;;  %v395_v36 = vld [vmem:[#allocation8 + $0x90] sm:$0xff]  ;;  %v424_v31 = vld [vmem:[#allocation8 + $0x178] sm:$0xff]  ;;  %v3273_v27 = vld [vmem:[%s3528_s4] ss:$0 sm:$0xff]  ;;  %s3040_s4 = smov [#allocation9]  }
  0x5b   :  { %2368 = vmatpush1.bf16.msra.mxu0 %v3119_v17  ;;  %205 = vmatprep.mubr.f32.mxu0 %v3037_v0  ;;  %v3144_v45 = vpack.c.bf16 %v398_v37, %v395_v36  ;;  %v3209_v32 = vpack.c.bf16 %v424_v31, %v421_v30  ;;  %s1783_s8 = sshll.u32 %s3040_s4, 4  ;;  %s1784_s8 = int_to_ptr.vmem [resolvable:$true] %s1783_s8 }
  0x5c   :  { %2370 = vmatprep.subr.bf16.mxu0 %v3122_v18  ;;  %s3002_s9 = scalar_lea.vmem %s1784_s8, 128  ;;  %p3007_p11 = scmp.lt.s32.totalorder %s1784_s8, %s1784_s8 }
  0x5d   :  { %2364 = vmatpush3.bf16.msra.mxu1 %v2361_v23  ;;  %v3190_v23 = vpack.c.bf16 %v422_v19, %v419_v16  ;;  %p3003_p10 = scmp.ne.s32.totalorder %s1784_s8, %s3002_s9  ;;  %p3008_p12 = scmp.lt.s32.totalorder %s3002_s9, %s3002_s9 }
  0x5e   :  { %206 = vmatmul.mubr.f32.gmra.mrb[2].mxu0 %v63_v24  ;;  %2397 = vmatprep.subr.bf16.mxu1 %v3038_v40 }
  0x5f   :  { %2372 = vmatpush1.bf16.msra.mxu0 %v3127_v25  ;;  %211 = vmatprep.mubr.f32.mxu0 %v3037_v0  ;;  %p3009_p13 = por %p3008_p12, %p3007_p11 }
  0x60   :  { %2374 = vmatprep.subr.bf16.mxu0 %v3130_v26  ;;  %2010 = vmatmul.mubr.f32.vlgmr.msra.gmra.mrb[0].mxu1 %v63_v24  ;;  %v3194_v24 = vpack.c.bf16 %v412_v22, %v409_v21 }
  0x61   :  { %2399 = vmatpush3.bf16.msra.mxu1 %v3140_v41  ;;  %2012 = vmatprep.mubr.f32.mxu1 %v64_v33  ;;  %p3010_p0 = pnand %p3009_p13, %p3003_p10 }
  0x62   :  { %212 = vmatmul.mubr.f32.gmra.mrb[4].mxu0 %v64_v33  ;;  %2400 = vmatprep.subr.bf16.mxu1 %v3038_v40  ;;  %v120_v33 = vlaneseq }
  0x63   :  { %2376 = vmatpush1.bf16.msra.mxu0 %v3134_v34  ;;  %217 = vmatprep.mubr.f32.mxu0 %v3037_v0 }
  0x64   :  { %2378 = vmatprep.subr.bf16.mxu0 %v3137_v35  ;;  %2013 = vmatmul.mubr.f32.gmra.mrb[2].mxu1 %v65_v44  ;;  %v121_v36 = vshrl.u32 %v120_v33, 7 }
  0x65   :  { %2402 = vmatpush3.bf16.msra.mxu1 %v3150_v51  ;;  %2015 = vmatprep.mubr.f32.mxu1 %v66_v54 }
  0x66   :  { %218 = vmatmul.mubr.f32.gmra.mrb[6].mxu0 %v65_v44  ;;  %2403 = vmatprep.subr.bf16.mxu1 %v3038_v40  ;;  %v130_v37 = vsub.s32 2, %v121_v36  ;;  %v122_v63 = vsub.s32 0, %v121_v36  ;;  %v126_v6 = vsub.s32 1, %v121_v36 }
  0x67   :  { %2380 = vmatpush1.bf16.msra.mxu0 %v3144_v45  ;;  %223 = vmatprep.mubr.f32.mxu0 %v3037_v0 }
  0x68   :  { %2382 = vmatprep.subr.bf16.mxu0 %v3147_v46  ;;  %2016 = vmatmul.mubr.f32.gmra.mrb[4].mxu1 %v67_v1  ;;  %v131_v39 = vrot.slane %v118_v38, %v130_v37  ;;  %v3267_v11 = vrot.slane %v118_v38, %v126_v6 }
  0x69   :  { %2405 = vmatpush3.bf16.msra.mxu1 %v3161_v61  ;;  %2018 = vmatprep.mubr.f32.mxu1 %v68_v3 }
  0x6a   :  { %224 = vmatmul.mubr.f32.gmra.mrb[8].mxu0 %v66_v54  ;;  %2406 = vmatprep.subr.bf16.mxu1 %v3038_v40 }
  0x6b   :  { %2384 = vmatpush1.bf16.msra.mxu0 %v3155_v55  ;;  %229 = vmatprep.mubr.f32.mxu0 %v3037_v0 }
  0x6c   :  { %2386 = vmatprep.subr.bf16.mxu0 %v3158_v56  ;;  %2019 = vmatmul.mubr.f32.gmra.mrb[6].mxu1 %v69_v14 }
  0x6d   :  { %2408 = vmatpush3.bf16.msra.mxu1 %v3172_v10  ;;  %2053 = vmatprep.mubr.msk.f32.mxu1 %vm3039_vm0, %v3037_v0 }
  0x6e   :  { %230 = vmatmul.mubr.f32.gmra.mrb[10].mxu0 %v67_v1  ;;  %2409 = vmatprep.subr.bf16.mxu1 %v3038_v40  ;;  %v3264_v1 = vrot.slane %v118_v38, %v122_v63 }
  0x6f   :  { %2388 = vmatpush1.bf16.msra.mxu0 %v3166_v2  ;;  %235 = vmatprep.mubr.f32.mxu0 %v3037_v0 }
  0x70   :  { %2390 = vmatprep.subr.bf16.mxu0 %v3169_v4 }
  0x71   :  { %2411 = vmatpush3.bf16.msra.mxu1 %v3183_v20 }
  0x72   :  { %236 = vmatmul.mubr.f32.gmra.mrb[12].mxu0 %v68_v3  ;;  %2412 = vmatprep.subr.bf16.mxu1 %v3038_v40 }
  0x73   :  { %2392 = vmatpush1.bf16.msra.mxu0 %v3177_v13  ;;  %241 = vmatprep.mubr.f32.mxu0 %v3037_v0 }
  0x74   :  { %2394 = vmatprep.subr.bf16.mxu0 %v3180_v15 }
  0x75   :  { %2414 = vmatpush3.bf16.msra.mxu1 %v3194_v24 }
  0x76   :  { %242 = vmatmul.mubr.f32.gmra.mrb[14].mxu0 %v69_v14  ;;  %2415 = vmatprep.subr.bf16.mxu1 %v3038_v40 }
  0x77   :  { %2396 = vmatpush1.bf16.msra.mxu0 %v3190_v23  ;;  %496 = vmatprep.mubr.f32.mxu0 %v3037_v0 }
  0x78   :  { %2422 = vmatprep.subr.bf16.mxu0 %v3117_v9 }
  0x79   :  { %2417 = vmatpush3.bf16.msra.mxu1 %v3201_v29 }
  0x7a   :  { %497 = vmatmul.mubr.f32.vlgmr.msra.gmra.mrb[0].mxu0 %v3037_v0  ;;  %2418 = vmatprep.subr.bf16.mxu1 %v3038_v40 }
  0x7b   :  { %2424 = vmatpush1.bf16.msra.mxu0 %v3119_v17  ;;  %670 = vmatprep.mubr.f32.mxu0 %v3037_v0 }
  0x7c   :  { %2426 = vmatprep.subr.bf16.mxu0 %v3122_v18 }
  0x7d   :  { %2420 = vmatpush3.bf16.msra.mxu1 %v3209_v32 }
  0x7e   :  { %2453 = vmatprep.subr.bf16.mxu1 %v3038_v40 }
  0x7f   :  { %2428 = vmatpush1.bf16.msra.mxu0 %v3127_v25 }
  0x80   :  { %2430 = vmatprep.subr.bf16.mxu0 %v3130_v26  ;;  %2054 = vmatmul.mubr.f32.vlgmr.msra.gmra.mrb[8].mxu1 %v3037_v0 }
  0x81   :  { %2455 = vmatpush3.bf16.msra.mxu1 %v3140_v41  ;;  %2088 = vmatprep.mubr.msk.f32.mxu1 %vm3039_vm0, %v3037_v0 }
  0x82   :  { %2456 = vmatprep.subr.bf16.mxu1 %v3038_v40 }
  0x83   :  { %2432 = vmatpush1.bf16.msra.mxu0 %v3134_v34 }
  0x84   :  { %2434 = vmatprep.subr.bf16.mxu0 %v3137_v35 }
  0x85   :  { %2458 = vmatpush3.bf16.msra.mxu1 %v3150_v51 }
  0x86   :  { %2459 = vmatprep.subr.bf16.mxu1 %v3038_v40 }
  0x87   :  { %2436 = vmatpush1.bf16.msra.mxu0 %v3144_v45 }
  0x88   :  { %2438 = vmatprep.subr.bf16.mxu0 %v3147_v46 }
  0x89   :  { %2461 = vmatpush3.bf16.msra.mxu1 %v3161_v61 }
  0x8a   :  { %2462 = vmatprep.subr.bf16.mxu1 %v3038_v40 }
  0x8b   :  { %2440 = vmatpush1.bf16.msra.mxu0 %v3155_v55 }
  0x8c   :  { %2442 = vmatprep.subr.bf16.mxu0 %v3158_v56 }
  0x8d   :  { %2464 = vmatpush3.bf16.msra.mxu1 %v3172_v10 }
  0x8e   :  { %2465 = vmatprep.subr.bf16.mxu1 %v3038_v40 }
  0x8f   :  { %2444 = vmatpush1.bf16.msra.mxu0 %v3166_v2 }
  0x90   :  { %2446 = vmatprep.subr.bf16.mxu0 %v3169_v4 }
  0x91   :  { %2467 = vmatpush3.bf16.msra.mxu1 %v3183_v20 }
  0x92   :  { %2468 = vmatprep.subr.bf16.mxu1 %v3038_v40 }
  0x93   :  { %2448 = vmatpush1.bf16.msra.mxu0 %v3177_v13 }
  0x94   :  { %2450 = vmatprep.subr.bf16.mxu0 %v3180_v15 }
  0x95   :  { %2470 = vmatpush3.bf16.msra.mxu1 %v3194_v24 }
  0x96   :  { %2471 = vmatprep.subr.bf16.mxu1 %v3038_v40 }
  0x97   :  { %2452 = vmatpush1.bf16.msra.mxu0 %v3190_v23 }
  0x98   :  { %2478 = vmatprep.subr.bf16.mxu0 %v3117_v9 }
  0x99   :  { %2473 = vmatpush3.bf16.msra.mxu1 %v3201_v29 }
  0x9a   :  { %2474 = vmatprep.subr.bf16.mxu1 %v3038_v40 }
  0x9d   :  { %2476 = vmatpush3.bf16.msra.mxu1 %v3209_v32 }
  0x9e   :  { %2509 = vmatprep.subr.bf16.mxu1 %v3038_v40 }
 0x133   :  { %v2011_v42 = vpop.f32.mrb[0].mxu1 }
 0x134   :  { %v3250_v43 = vadd.f32 %v2011_v42, %v131_v39  ;;  %v314_v44 = vpop.f32.mrb[1].mxu1 }
 0x135   :  { %v315_v33 = vadd.f32 %v314_v44, %v131_v39 }
 0x137   :  { %v2014_v47 = vpop.f32.mrb[2].mxu1 }
 0x138   :  { %v3252_v48 = vadd.f32 %v2014_v47, %v131_v39  ;;  %v324_v49 = vpop.f32.mrb[3].mxu1 }
 0x139   :  { %v3254_v50 = vadd.f32 %v324_v49, %v131_v39 }
 0x13b   :  { %v2017_v52 = vpop.f32.mrb[4].mxu1 }
 0x13c   :  { %v3256_v53 = vadd.f32 %v2017_v52, %v131_v39  ;;  %v334_v54 = vpop.f32.mrb[5].mxu1 }
 0x13d   :  { %v3258_v57 = vadd.f32 %v334_v54, %v131_v39 }
 0x13f   :  { %v2020_v58 = vpop.f32.mrb[6].mxu1 }
 0x140   :  { %v3260_v59 = vadd.f32 %v2020_v58, %v131_v39  ;;  %v344_v60 = vpop.f32.mrb[7].mxu1 }
 0x141   :  { %v3262_v62 = vadd.f32 %v344_v60, %v131_v39 }
 0x14d   :  { %v498_v3 = vpop.f32.mrb[0].mxu0 }
 0x14e   :  { %v2813_v5 = vadd.f32 %v498_v3, %v3264_v1  ;;  %v500_v7 = vpop.f32.mrb[1].mxu0 }
 0x14f   :  { %v2814_v12 = vadd.f32 %v500_v7, %v3267_v11 }
 0x150   :  { %v1800_v8 = vmul.f32 -1.442695, %v2813_v5 }
 0x151   :  { %v1801_v19 = vmul.f32 -1.442695, %v2814_v12 }
 0x152   :  { %2856 = vpow2.f32 %v1800_v8 }
 0x153   :  { %v569_v14 = vpop.f32.mrb[8].mxu1  ;;  %2858 = vpow2.f32 %v1801_v19 }
 0x154   :  { %v2055_v16 = vpop.f32.mrb[9].mxu1  ;;  %v593_v28 = vadd.f32 %v3273_v27, %v569_v14 }
 0x15c   :  { %v2857_v21 = vpop.eup %2856 }
 0x15d   :  { %v577_v22 = vadd.f32 1.0, %v2857_v21  ;;  %v2859_v30 = vpop.eup %2858 }
 0x15e   :  { %v584_v37 = vadd.f32 1.0, %v2859_v30 }
 0x15f   :  { %2860 = vrcp.f32 %v577_v22 }
 0x169   :  { %v2861_v31 = vpop.eup %2860 }
 0x16a   :  { %v594_v36 = vmul.f32 %v2861_v31, %v593_v28 }
 0x16c   :  { %v595_v38 = vadd.f32 %v594_v36, %v315_v33 }
 0x16e   :  { %2862 = vtanh.f32 %v595_v38 }
 0x16f   :  { %2864 = vrcp.f32 %v584_v37 }
 0x178   :  { %v2863_v42 = vpop.eup %2862 }
 0x179   :  { %v597_v47 = vsub.f32 0.0, %v2863_v42  ;;  %v2865_v49 = vpop.eup %2864 }
 0x17b   :  { %v598_v52 = vmul.f32 %v2865_v49, %v597_v47 }
 0x17d   :  { %v599_v54 = vadd.f32 %v2863_v42, %v598_v52 }
 0x17f   :  { %671 = vmatmul.mubr.f32.vlgmr.msra.gmra.mrb[2].mxu0 %v599_v54  ;;  %2089 = vmatmul.mubr.f32.vlgmr.msra.gmra.mrb[10].mxu1 %v599_v54 }
 0x180   :  { %2480 = vmatpush1.bf16.msra.mxu0 %v3119_v17  ;;  %2511 = vmatpush3.bf16.msra.mxu1 %v3140_v41 }
 0x181   :  { %2482 = vmatprep.subr.bf16.mxu0 %v3122_v18  ;;  %2512 = vmatprep.subr.bf16.mxu1 %v3038_v40 }
 0x182   :  { %838 = vmatprep.mubr.f32.mxu0 %v3037_v0  ;;  %2123 = vmatprep.mubr.msk.f32.mxu1 %vm3039_vm0, %v3037_v0 }
 0x184   :  { %2484 = vmatpush1.bf16.msra.mxu0 %v3127_v25  ;;  %2514 = vmatpush3.bf16.msra.mxu1 %v3150_v51 }
 0x185   :  { %2486 = vmatprep.subr.bf16.mxu0 %v3130_v26  ;;  %2515 = vmatprep.subr.bf16.mxu1 %v3038_v40 }
 0x188   :  { %2488 = vmatpush1.bf16.msra.mxu0 %v3134_v34  ;;  %2517 = vmatpush3.bf16.msra.mxu1 %v3161_v61 }
 0x189   :  { %2490 = vmatprep.subr.bf16.mxu0 %v3137_v35  ;;  %2518 = vmatprep.subr.bf16.mxu1 %v3038_v40 }
 0x18c   :  { %2492 = vmatpush1.bf16.msra.mxu0 %v3144_v45  ;;  %2520 = vmatpush3.bf16.msra.mxu1 %v3172_v10 }
 0x18d   :  { %2494 = vmatprep.subr.bf16.mxu0 %v3147_v46  ;;  %2521 = vmatprep.subr.bf16.mxu1 %v3038_v40 }
 0x190   :  { %2496 = vmatpush1.bf16.msra.mxu0 %v3155_v55  ;;  %2523 = vmatpush3.bf16.msra.mxu1 %v3183_v20 }
 0x191   :  { %2498 = vmatprep.subr.bf16.mxu0 %v3158_v56  ;;  %2524 = vmatprep.subr.bf16.mxu1 %v3038_v40 }
 0x194   :  { %2500 = vmatpush1.bf16.msra.mxu0 %v3166_v2  ;;  %2526 = vmatpush3.bf16.msra.mxu1 %v3194_v24 }
 0x195   :  { %2502 = vmatprep.subr.bf16.mxu0 %v3169_v4  ;;  %2527 = vmatprep.subr.bf16.mxu1 %v3038_v40 }
 0x198   :  { %2504 = vmatpush1.bf16.msra.mxu0 %v3177_v13  ;;  %2529 = vmatpush3.bf16.msra.mxu1 %v3201_v29 }
 0x199   :  { %2506 = vmatprep.subr.bf16.mxu0 %v3180_v15  ;;  %2530 = vmatprep.subr.bf16.mxu1 %v3038_v40 }
 0x19c   :  { %2508 = vmatpush1.bf16.msra.mxu0 %v3190_v23  ;;  %2532 = vmatpush3.bf16.msra.mxu1 %v3209_v32 }
 0x19d   :  { %2534 = vmatprep.subr.bf16.mxu0 %v3117_v9  ;;  %2565 = vmatprep.subr.bf16.mxu1 %v3038_v40 }
 0x252   :  { %v672_v39 = vpop.f32.mrb[2].mxu0  ;;  %v743_v44 = vpop.f32.mrb[10].mxu1 }
 0x253   :  { %v2815_v58 = vadd.f32 %v672_v39, %v3264_v1  ;;  %v674_v60 = vpop.f32.mrb[3].mxu0  ;;  %v2090_v63 = vpop.f32.mrb[11].mxu1  ;;  %v761_v14 = vadd.f32 %v3273_v27, %v743_v44 }
 0x254   :  { %v2816_v5 = vadd.f32 %v674_v60, %v3267_v11 }
 0x255   :  { %v1803_v3 = vmul.f32 -1.442695, %v2815_v58 }
 0x256   :  { %v1804_v6 = vmul.f32 -1.442695, %v2816_v5 }
 0x257   :  { %2866 = vpow2.f32 %v1803_v3 }
 0x258   :  { %2868 = vpow2.f32 %v1804_v6 }
 0x261   :  { %v2867_v7 = vpop.eup %2866 }
 0x262   :  { %v751_v8 = vadd.f32 1.0, %v2867_v7  ;;  %v2869_v12 = vpop.eup %2868 }
 0x263   :  { %v758_v22 = vadd.f32 1.0, %v2869_v12 }
 0x264   :  { %2870 = vrcp.f32 %v751_v8 }
 0x26e   :  { %v2871_v16 = vpop.eup %2870 }
 0x26f   :  { %v762_v19 = vmul.f32 %v2871_v16, %v761_v14 }
 0x271   :  { %v763_v21 = vadd.f32 %v762_v19, %v3250_v43 }
 0x273   :  { %2872 = vtanh.f32 %v763_v21 }
 0x274   :  { %2874 = vrcp.f32 %v758_v22 }
 0x27d   :  { %v2873_v28 = vpop.eup %2872 }
 0x27e   :  { %v765_v30 = vsub.f32 %v599_v54, %v2873_v28  ;;  %v2875_v31 = vpop.eup %2874 }
 0x280   :  { %v766_v33 = vmul.f32 %v2875_v31, %v765_v30 }
 0x282   :  { %v767_v36 = vadd.f32 %v2873_v28, %v766_v33 }
 0x284   :  { %839 = vmatmul.mubr.f32.vlgmr.msra.gmra.mrb[4].mxu0 %v767_v36  ;;  %2124 = vmatmul.mubr.f32.vlgmr.msra.gmra.mrb[12].mxu1 %v767_v36 }
 0x285   :  { %2536 = vmatpush1.bf16.msra.mxu0 %v3119_v17  ;;  %2567 = vmatpush3.bf16.msra.mxu1 %v3140_v41 }
 0x286   :  { %2538 = vmatprep.subr.bf16.mxu0 %v3122_v18  ;;  %2568 = vmatprep.subr.bf16.mxu1 %v3038_v40 }
 0x287   :  { %1006 = vmatprep.mubr.f32.mxu0 %v3037_v0  ;;  %2158 = vmatprep.mubr.msk.f32.mxu1 %vm3039_vm0, %v3037_v0 }
 0x289   :  { %2540 = vmatpush1.bf16.msra.mxu0 %v3127_v25  ;;  %2570 = vmatpush3.bf16.msra.mxu1 %v3150_v51 }
 0x28a   :  { %2542 = vmatprep.subr.bf16.mxu0 %v3130_v26  ;;  %2571 = vmatprep.subr.bf16.mxu1 %v3038_v40 }
 0x28d   :  { %2544 = vmatpush1.bf16.msra.mxu0 %v3134_v34  ;;  %2573 = vmatpush3.bf16.msra.mxu1 %v3161_v61 }
 0x28e   :  { %2546 = vmatprep.subr.bf16.mxu0 %v3137_v35  ;;  %2574 = vmatprep.subr.bf16.mxu1 %v3038_v40 }
 0x291   :  { %2548 = vmatpush1.bf16.msra.mxu0 %v3144_v45  ;;  %2576 = vmatpush3.bf16.msra.mxu1 %v3172_v10 }
 0x292   :  { %2550 = vmatprep.subr.bf16.mxu0 %v3147_v46  ;;  %2577 = vmatprep.subr.bf16.mxu1 %v3038_v40 }
 0x295   :  { %2552 = vmatpush1.bf16.msra.mxu0 %v3155_v55  ;;  %2579 = vmatpush3.bf16.msra.mxu1 %v3183_v20 }
 0x296   :  { %2554 = vmatprep.subr.bf16.mxu0 %v3158_v56  ;;  %2580 = vmatprep.subr.bf16.mxu1 %v3038_v40 }
 0x299   :  { %2556 = vmatpush1.bf16.msra.mxu0 %v3166_v2  ;;  %2582 = vmatpush3.bf16.msra.mxu1 %v3194_v24 }
 0x29a   :  { %2558 = vmatprep.subr.bf16.mxu0 %v3169_v4  ;;  %2583 = vmatprep.subr.bf16.mxu1 %v3038_v40 }
 0x29d   :  { %2560 = vmatpush1.bf16.msra.mxu0 %v3177_v13  ;;  %2585 = vmatpush3.bf16.msra.mxu1 %v3201_v29 }
 0x29e   :  { %2562 = vmatprep.subr.bf16.mxu0 %v3180_v15  ;;  %2586 = vmatprep.subr.bf16.mxu1 %v3038_v40 }
 0x2a1   :  { %2564 = vmatpush1.bf16.msra.mxu0 %v3190_v23  ;;  %2588 = vmatpush3.bf16.msra.mxu1 %v3209_v32 }
 0x2a2   :  { %2590 = vmatprep.subr.bf16.mxu0 %v3117_v9  ;;  %2621 = vmatprep.subr.bf16.mxu1 %v3038_v40 }
 0x357   :  { %v840_v43 = vpop.f32.mrb[4].mxu0  ;;  %v911_v37 = vpop.f32.mrb[12].mxu1 }
 0x358   :  { %v2817_v38 = vadd.f32 %v840_v43, %v3264_v1  ;;  %v842_v42 = vpop.f32.mrb[5].mxu0  ;;  %v2125_v47 = vpop.f32.mrb[13].mxu1  ;;  %v929_v60 = vadd.f32 %v3273_v27, %v911_v37 }
 0x359   :  { %v2818_v52 = vadd.f32 %v842_v42, %v3267_v11 }
 0x35a   :  { %v1805_v49 = vmul.f32 -1.442695, %v2817_v38 }
 0x35b   :  { %v1806_v54 = vmul.f32 -1.442695, %v2818_v52 }
 0x35c   :  { %2876 = vpow2.f32 %v1805_v49 }
 0x35d   :  { %2878 = vpow2.f32 %v1806_v54 }
 0x366   :  { %v2877_v39 = vpop.eup %2876 }
 0x367   :  { %v919_v44 = vadd.f32 1.0, %v2877_v39  ;;  %v2879_v58 = vpop.eup %2878 }
 0x368   :  { %v926_v6 = vadd.f32 1.0, %v2879_v58 }
 0x369   :  { %2880 = vrcp.f32 %v919_v44 }
 0x373   :  { %v2881_v63 = vpop.eup %2880 }
 0x374   :  { %v930_v3 = vmul.f32 %v2881_v63, %v929_v60 }
 0x376   :  { %v931_v5 = vadd.f32 %v930_v3, %v3254_v50 }
 0x378   :  { %2882 = vtanh.f32 %v931_v5 }
 0x379   :  { %2884 = vrcp.f32 %v926_v6 }
 0x382   :  { %v2883_v7 = vpop.eup %2882 }
 0x383   :  { %v933_v8 = vsub.f32 %v767_v36, %v2883_v7  ;;  %v2885_v12 = vpop.eup %2884 }
 0x385   :  { %v934_v14 = vmul.f32 %v2885_v12, %v933_v8 }
 0x387   :  { %v935_v16 = vadd.f32 %v2883_v7, %v934_v14 }
 0x389   :  { %1007 = vmatmul.mubr.f32.vlgmr.msra.gmra.mrb[6].mxu0 %v935_v16  ;;  %2159 = vmatmul.mubr.f32.vlgmr.msra.gmra.mrb[14].mxu1 %v935_v16 }
 0x38a   :  { %2592 = vmatpush1.bf16.msra.mxu0 %v3119_v17  ;;  %2623 = vmatpush3.bf16.msra.mxu1 %v3140_v41 }
 0x38b   :  { %2594 = vmatprep.subr.bf16.mxu0 %v3122_v18  ;;  %2624 = vmatprep.subr.bf16.mxu1 %v3038_v40 }
 0x38c   :  { %1174 = vmatprep.mubr.f32.mxu0 %v3037_v0  ;;  %2193 = vmatprep.mubr.msk.f32.mxu1 %vm3039_vm0, %v3037_v0 }
 0x38e   :  { %2596 = vmatpush1.bf16.msra.mxu0 %v3127_v25  ;;  %2626 = vmatpush3.bf16.msra.mxu1 %v3150_v51 }
 0x38f   :  { %2598 = vmatprep.subr.bf16.mxu0 %v3130_v26  ;;  %2627 = vmatprep.subr.bf16.mxu1 %v3038_v40 }
 0x392   :  { %2600 = vmatpush1.bf16.msra.mxu0 %v3134_v34  ;;  %2629 = vmatpush3.bf16.msra.mxu1 %v3161_v61 }
 0x393   :  { %2602 = vmatprep.subr.bf16.mxu0 %v3137_v35  ;;  %2630 = vmatprep.subr.bf16.mxu1 %v3038_v40 }
 0x396   :  { %2604 = vmatpush1.bf16.msra.mxu0 %v3144_v45  ;;  %2632 = vmatpush3.bf16.msra.mxu1 %v3172_v10 }
 0x397   :  { %2606 = vmatprep.subr.bf16.mxu0 %v3147_v46  ;;  %2633 = vmatprep.subr.bf16.mxu1 %v3038_v40 }
 0x39a   :  { %2608 = vmatpush1.bf16.msra.mxu0 %v3155_v55  ;;  %2635 = vmatpush3.bf16.msra.mxu1 %v3183_v20 }
 0x39b   :  { %2610 = vmatprep.subr.bf16.mxu0 %v3158_v56  ;;  %2636 = vmatprep.subr.bf16.mxu1 %v3038_v40 }
 0x39e   :  { %2612 = vmatpush1.bf16.msra.mxu0 %v3166_v2  ;;  %2638 = vmatpush3.bf16.msra.mxu1 %v3194_v24 }
 0x39f   :  { %2614 = vmatprep.subr.bf16.mxu0 %v3169_v4  ;;  %2639 = vmatprep.subr.bf16.mxu1 %v3038_v40 }
 0x3a2   :  { %2616 = vmatpush1.bf16.msra.mxu0 %v3177_v13  ;;  %2641 = vmatpush3.bf16.msra.mxu1 %v3201_v29 }
 0x3a3   :  { %2618 = vmatprep.subr.bf16.mxu0 %v3180_v15  ;;  %2642 = vmatprep.subr.bf16.mxu1 %v3038_v40 }
 0x3a6   :  { %2620 = vmatpush1.bf16.msra.mxu0 %v3190_v23  ;;  %2644 = vmatpush3.bf16.msra.mxu1 %v3209_v32 }
 0x3a7   :  { %2646 = vmatprep.subr.bf16.mxu0 %v3117_v9  ;;  %2677 = vmatprep.subr.bf16.mxu1 %v3038_v40 }
 0x45c   :  { %v1008_v50 = vpop.f32.mrb[6].mxu0  ;;  %v1079_v19 = vpop.f32.mrb[14].mxu1 }
 0x45d   :  { %v2819_v21 = vadd.f32 %v1008_v50, %v3264_v1  ;;  %v1010_v22 = vpop.f32.mrb[7].mxu0  ;;  %v2160_v28 = vpop.f32.mrb[15].mxu1  ;;  %v1097_v38 = vadd.f32 %v3273_v27, %v1079_v19 }
 0x45e   :  { %v2820_v31 = vadd.f32 %v1010_v22, %v3267_v11 }
 0x45f   :  { %v1807_v30 = vmul.f32 -1.442695, %v2819_v21 }
 0x460   :  { %v1808_v33 = vmul.f32 -1.442695, %v2820_v31 }
 0x461   :  { %2886 = vpow2.f32 %v1807_v30 }
 0x462   :  { %2888 = vpow2.f32 %v1808_v33 }
 0x46b   :  { %v2887_v36 = vpop.eup %2886 }
 0x46c   :  { %v1087_v43 = vadd.f32 1.0, %v2887_v36  ;;  %v2889_v37 = vpop.eup %2888 }
 0x46d   :  { %v1094_v52 = vadd.f32 1.0, %v2889_v37 }
 0x46e   :  { %2890 = vrcp.f32 %v1087_v43 }
 0x478   :  { %v2891_v42 = vpop.eup %2890 }
 0x479   :  { %v1098_v47 = vmul.f32 %v2891_v42, %v1097_v38 }
 0x47b   :  { %v1099_v49 = vadd.f32 %v1098_v47, %v3252_v48 }
 0x47d   :  { %2892 = vtanh.f32 %v1099_v49 }
 0x47e   :  { %2894 = vrcp.f32 %v1094_v52 }
 0x487   :  { %v2893_v54 = vpop.eup %2892 }
 0x488   :  { %v1101_v39 = vsub.f32 %v935_v16, %v2893_v54  ;;  %v2895_v44 = vpop.eup %2894 }
 0x48a   :  { %v1102_v58 = vmul.f32 %v2895_v44, %v1101_v39 }
 0x48c   :  { %v1103_v60 = vadd.f32 %v2893_v54, %v1102_v58 }
 0x48e   :  { %1175 = vmatmul.mubr.f32.vlgmr.msra.gmra.mrb[8].mxu0 %v1103_v60  ;;  %2194 = vmatmul.mubr.f32.vlgmr.msra.gmra.mrb[16].mxu1 %v1103_v60 }
 0x48f   :  { %2648 = vmatpush1.bf16.msra.mxu0 %v3119_v17  ;;  %2679 = vmatpush3.bf16.msra.mxu1 %v3140_v41 }
 0x490   :  { %2650 = vmatprep.subr.bf16.mxu0 %v3122_v18  ;;  %2680 = vmatprep.subr.bf16.mxu1 %v3038_v40 }
 0x491   :  { %1342 = vmatprep.mubr.f32.mxu0 %v3037_v0  ;;  %2228 = vmatprep.mubr.msk.f32.mxu1 %vm3039_vm0, %v3037_v0 }
 0x493   :  { %2652 = vmatpush1.bf16.msra.mxu0 %v3127_v25  ;;  %2682 = vmatpush3.bf16.msra.mxu1 %v3150_v51 }
 0x494   :  { %2654 = vmatprep.subr.bf16.mxu0 %v3130_v26  ;;  %2683 = vmatprep.subr.bf16.mxu1 %v3038_v40 }
 0x497   :  { %2656 = vmatpush1.bf16.msra.mxu0 %v3134_v34  ;;  %2685 = vmatpush3.bf16.msra.mxu1 %v3161_v61 }
 0x498   :  { %2658 = vmatprep.subr.bf16.mxu0 %v3137_v35  ;;  %2686 = vmatprep.subr.bf16.mxu1 %v3038_v40 }
 0x49b   :  { %2660 = vmatpush1.bf16.msra.mxu0 %v3144_v45  ;;  %2688 = vmatpush3.bf16.msra.mxu1 %v3172_v10 }
 0x49c   :  { %2662 = vmatprep.subr.bf16.mxu0 %v3147_v46  ;;  %2689 = vmatprep.subr.bf16.mxu1 %v3038_v40 }
 0x49f   :  { %2664 = vmatpush1.bf16.msra.mxu0 %v3155_v55  ;;  %2691 = vmatpush3.bf16.msra.mxu1 %v3183_v20 }
 0x4a0   :  { %2666 = vmatprep.subr.bf16.mxu0 %v3158_v56  ;;  %2692 = vmatprep.subr.bf16.mxu1 %v3038_v40 }
 0x4a3   :  { %2668 = vmatpush1.bf16.msra.mxu0 %v3166_v2  ;;  %2694 = vmatpush3.bf16.msra.mxu1 %v3194_v24 }
 0x4a4   :  { %2670 = vmatprep.subr.bf16.mxu0 %v3169_v4  ;;  %2695 = vmatprep.subr.bf16.mxu1 %v3038_v40 }
 0x4a7   :  { %2672 = vmatpush1.bf16.msra.mxu0 %v3177_v13  ;;  %2697 = vmatpush3.bf16.msra.mxu1 %v3201_v29 }
 0x4a8   :  { %2674 = vmatprep.subr.bf16.mxu0 %v3180_v15  ;;  %2698 = vmatprep.subr.bf16.mxu1 %v3038_v40 }
 0x4ab   :  { %2676 = vmatpush1.bf16.msra.mxu0 %v3190_v23  ;;  %2700 = vmatpush3.bf16.msra.mxu1 %v3209_v32 }
 0x4ac   :  { %2702 = vmatprep.subr.bf16.mxu0 %v3117_v9  ;;  %2733 = vmatprep.subr.bf16.mxu1 %v3038_v40 }
 0x561   :  { %v1176_v48 = vpop.f32.mrb[8].mxu0  ;;  %v1247_v63 = vpop.f32.mrb[16].mxu1 }
 0x562   :  { %v2821_v3 = vadd.f32 %v1176_v48, %v3264_v1  ;;  %v1178_v5 = vpop.f32.mrb[9].mxu0  ;;  %v2195_v6 = vpop.f32.mrb[17].mxu1  ;;  %v1265_v19 = vadd.f32 %v3273_v27, %v1247_v63 }
 0x563   :  { %v2822_v8 = vadd.f32 %v1178_v5, %v3267_v11 }
 0x564   :  { %v1809_v7 = vmul.f32 -1.442695, %v2821_v3 }
 0x565   :  { %v1810_v12 = vmul.f32 -1.442695, %v2822_v8 }
 0x566   :  { %2896 = vpow2.f32 %v1809_v7 }
 0x567   :  { %2898 = vpow2.f32 %v1810_v12 }
 0x570   :  { %v2897_v14 = vpop.eup %2896 }
 0x571   :  { %v1255_v16 = vadd.f32 1.0, %v2897_v14  ;;  %v2899_v50 = vpop.eup %2898 }
 0x572   :  { %v1262_v30 = vadd.f32 1.0, %v2899_v50 }
 0x573   :  { %2900 = vrcp.f32 %v1255_v16 }
 0x57d   :  { %v2901_v21 = vpop.eup %2900 }
 0x57e   :  { %v1266_v22 = vmul.f32 %v2901_v21, %v1265_v19 }
 0x580   :  { %v1267_v28 = vadd.f32 %v1266_v22, %v3258_v57 }
 0x582   :  { %2902 = vtanh.f32 %v1267_v28 }
 0x583   :  { %2904 = vrcp.f32 %v1262_v30 }
 0x58c   :  { %v2903_v31 = vpop.eup %2902 }
 0x58d   :  { %v1269_v33 = vsub.f32 %v1103_v60, %v2903_v31  ;;  %v2905_v36 = vpop.eup %2904 }
 0x58f   :  { %v1270_v43 = vmul.f32 %v2905_v36, %v1269_v33 }
 0x591   :  { %v1271_v37 = vadd.f32 %v2903_v31, %v1270_v43 }
 0x593   :  { %1343 = vmatmul.mubr.f32.vlgmr.msra.gmra.mrb[10].mxu0 %v1271_v37  ;;  %2229 = vmatmul.mubr.f32.vlgmr.msra.gmra.mrb[18].mxu1 %v1271_v37 }
 0x594   :  { %2704 = vmatpush1.bf16.msra.mxu0 %v3119_v17  ;;  %2735 = vmatpush3.bf16.msra.mxu1 %v3140_v41 }
 0x595   :  { %2706 = vmatprep.subr.bf16.mxu0 %v3122_v18  ;;  %2736 = vmatprep.subr.bf16.mxu1 %v3038_v40 }
 0x596   :  { %1510 = vmatprep.mubr.f32.mxu0 %v3037_v0  ;;  %2263 = vmatprep.mubr.msk.f32.mxu1 %vm3039_vm0, %v3037_v0 }
 0x598   :  { %2708 = vmatpush1.bf16.msra.mxu0 %v3127_v25  ;;  %2738 = vmatpush3.bf16.msra.mxu1 %v3150_v51 }
 0x599   :  { %2710 = vmatprep.subr.bf16.mxu0 %v3130_v26  ;;  %2739 = vmatprep.subr.bf16.mxu1 %v3038_v40 }
 0x59c   :  { %2712 = vmatpush1.bf16.msra.mxu0 %v3134_v34  ;;  %2741 = vmatpush3.bf16.msra.mxu1 %v3161_v61 }
 0x59d   :  { %2714 = vmatprep.subr.bf16.mxu0 %v3137_v35  ;;  %2742 = vmatprep.subr.bf16.mxu1 %v3038_v40 }
 0x5a0   :  { %2716 = vmatpush1.bf16.msra.mxu0 %v3144_v45  ;;  %2744 = vmatpush3.bf16.msra.mxu1 %v3172_v10 }
 0x5a1   :  { %2718 = vmatprep.subr.bf16.mxu0 %v3147_v46  ;;  %2745 = vmatprep.subr.bf16.mxu1 %v3038_v40 }
 0x5a4   :  { %2720 = vmatpush1.bf16.msra.mxu0 %v3155_v55  ;;  %2747 = vmatpush3.bf16.msra.mxu1 %v3183_v20 }
 0x5a5   :  { %2722 = vmatprep.subr.bf16.mxu0 %v3158_v56  ;;  %2748 = vmatprep.subr.bf16.mxu1 %v3038_v40 }
 0x5a8   :  { %2724 = vmatpush1.bf16.msra.mxu0 %v3166_v2  ;;  %2750 = vmatpush3.bf16.msra.mxu1 %v3194_v24 }
 0x5a9   :  { %2726 = vmatprep.subr.bf16.mxu0 %v3169_v4  ;;  %2751 = vmatprep.subr.bf16.mxu1 %v3038_v40 }
 0x5ac   :  { %2728 = vmatpush1.bf16.msra.mxu0 %v3177_v13  ;;  %2753 = vmatpush3.bf16.msra.mxu1 %v3201_v29 }
 0x5ad   :  { %2730 = vmatprep.subr.bf16.mxu0 %v3180_v15  ;;  %2754 = vmatprep.subr.bf16.mxu1 %v3038_v40 }
 0x5b0   :  { %2732 = vmatpush1.bf16.msra.mxu0 %v3190_v23  ;;  %2756 = vmatpush3.bf16.msra.mxu1 %v3209_v32 }
 0x5b1   :  { %2758 = vmatprep.subr.bf16.mxu0 %v3117_v9  ;;  %2789 = vmatprep.subr.bf16.mxu1 %v3038_v40 }
 0x666   :  { %v1344_v57 = vpop.f32.mrb[10].mxu0  ;;  %v1415_v38 = vpop.f32.mrb[18].mxu1 }
 0x667   :  { %v2823_v42 = vadd.f32 %v1344_v57, %v3264_v1  ;;  %v1346_v47 = vpop.f32.mrb[11].mxu0  ;;  %v2230_v49 = vpop.f32.mrb[19].mxu1  ;;  %v1433_v9 = vadd.f32 %v3273_v27, %v1415_v38 }
 0x668   :  { %v2824_v54 = vadd.f32 %v1346_v47, %v3267_v11 }
 0x669   :  { %v1811_v52 = vmul.f32 -1.442695, %v2823_v42 }
 0x66a   :  { %v1812_v39 = vmul.f32 -1.442695, %v2824_v54 }
 0x66b   :  { %2906 = vpow2.f32 %v1811_v52 }
 0x66c   :  { %2908 = vpow2.f32 %v1812_v39 }
 0x675   :  { %v2907_v44 = vpop.eup %2906 }
 0x676   :  { %v1423_v58 = vadd.f32 1.0, %v2907_v44  ;;  %v2909_v60 = vpop.eup %2908 }
 0x677   :  { %v1430_v5 = vadd.f32 1.0, %v2909_v60 }
 0x678   :  { %2910 = vrcp.f32 %v1423_v58 }
 0x682   :  { %v2911_v48 = vpop.eup %2910 }
 0x683   :  { %v1434_v63 = vmul.f32 %v2911_v48, %v1433_v9 }
 0x685   :  { %v1435_v3 = vadd.f32 %v1434_v63, %v3256_v53 }
 0x687   :  { %2912 = vtanh.f32 %v1435_v3 }
 0x688   :  { %2914 = vrcp.f32 %v1430_v5 }
 0x691   :  { %v2913_v6 = vpop.eup %2912 }
 0x692   :  { %v1437_v7 = vsub.f32 %v1271_v37, %v2913_v6  ;;  %v2915_v8 = vpop.eup %2914 }
 0x694   :  { %v1438_v12 = vmul.f32 %v2915_v8, %v1437_v7 }
 0x696   :  { %v1439_v14 = vadd.f32 %v2913_v6, %v1438_v12 }
 0x698   :  { %1511 = vmatmul.mubr.f32.vlgmr.msra.gmra.mrb[12].mxu0 %v1439_v14  ;;  %2264 = vmatmul.mubr.f32.vlgmr.msra.gmra.mrb[20].mxu1 %v1439_v14 }
 0x699   :  { %2760 = vmatpush1.bf16.msra.mxu0 %v3119_v17  ;;  %2791 = vmatpush3.bf16.msra.mxu1 %v3140_v41 }
 0x69a   :  { %2762 = vmatprep.subr.bf16.mxu0 %v3122_v18  ;;  %2792 = vmatprep.subr.bf16.mxu1 %v3038_v40 }
 0x69b   :  { %1678 = vmatprep.mubr.f32.mxu0 %v3037_v0  ;;  %2298 = vmatprep.mubr.msk.f32.mxu1 %vm3039_vm0, %v3037_v0 }
 0x69d   :  { %2764 = vmatpush1.bf16.msra.mxu0 %v3127_v25  ;;  %2794 = vmatpush3.bf16.msra.mxu1 %v3150_v51 }
 0x69e   :  { %2766 = vmatprep.subr.bf16.mxu0 %v3130_v26  ;;  %2795 = vmatprep.subr.bf16.mxu1 %v3038_v40 }
 0x6a1   :  { %2768 = vmatpush1.bf16.msra.mxu0 %v3134_v34  ;;  %2797 = vmatpush3.bf16.msra.mxu1 %v3161_v61 }
 0x6a2   :  { %2770 = vmatprep.subr.bf16.mxu0 %v3137_v35  ;;  %2798 = vmatprep.subr.bf16.mxu1 %v3038_v40 }
 0x6a5   :  { %2772 = vmatpush1.bf16.msra.mxu0 %v3144_v45  ;;  %2800 = vmatpush3.bf16.msra.mxu1 %v3172_v10 }
 0x6a6   :  { %2774 = vmatprep.subr.bf16.mxu0 %v3147_v46  ;;  %2801 = vmatprep.subr.bf16.mxu1 %v3038_v40 }
 0x6a9   :  { %2776 = vmatpush1.bf16.msra.mxu0 %v3155_v55  ;;  %2803 = vmatpush3.bf16.msra.mxu1 %v3183_v20 }
 0x6aa   :  { %2778 = vmatprep.subr.bf16.mxu0 %v3158_v56  ;;  %2804 = vmatprep.subr.bf16.mxu1 %v3038_v40 }
 0x6ad   :  { %2780 = vmatpush1.bf16.msra.mxu0 %v3166_v2  ;;  %2806 = vmatpush3.bf16.msra.mxu1 %v3194_v24 }
 0x6ae   :  { %2782 = vmatprep.subr.bf16.mxu0 %v3169_v4  ;;  %2807 = vmatprep.subr.bf16.mxu1 %v3038_v40 }
 0x6b1   :  { %2784 = vmatpush1.bf16.msra.mxu0 %v3177_v13  ;;  %2809 = vmatpush3.bf16.msra.mxu1 %v3201_v29 }
 0x6b2   :  { %2786 = vmatprep.subr.bf16.mxu0 %v3180_v15  ;;  %2810 = vmatprep.subr.bf16.mxu1 %v3038_v40 }
 0x6b5   :  { %2788 = vmatpush1.bf16.msra.mxu0 %v3190_v23  ;;  %2812 = vmatpush3.bf16.msra.mxu1 %v3209_v32 }
 0x76b   :  { %v1512_v0 = vpop.f32.mrb[12].mxu0  ;;  %v1583_v17 = vpop.f32.mrb[20].mxu1 }
 0x76c   :  { %v2825_v18 = vadd.f32 %v1512_v0, %v3264_v1  ;;  %v1514_v25 = vpop.f32.mrb[13].mxu0  ;;  %v2265_v26 = vpop.f32.mrb[21].mxu1  ;;  %v1601_v51 = vadd.f32 %v3273_v27, %v1583_v17 }
 0x76d   :  { %v2826_v35 = vadd.f32 %v1514_v25, %v3267_v11 }
 0x76e   :  { %v1813_v34 = vmul.f32 -1.442695, %v2825_v18 }
 0x76f   :  { %v1814_v41 = vmul.f32 -1.442695, %v2826_v35 }
 0x770   :  { %2916 = vpow2.f32 %v1813_v34 }
 0x771   :  { %2918 = vpow2.f32 %v1814_v41 }
 0x77a   :  { %v2917_v45 = vpop.eup %2916 }
 0x77b   :  { %v1591_v46 = vadd.f32 1.0, %v2917_v45  ;;  %v2919_v40 = vpop.eup %2918 }
 0x77c   :  { %v1598_v2 = vadd.f32 1.0, %v2919_v40 }
 0x77d   :  { %2920 = vrcp.f32 %v1591_v46 }
 0x787   :  { %v2921_v55 = vpop.eup %2920 }
 0x788   :  { %v1602_v56 = vmul.f32 %v2921_v55, %v1601_v51 }
 0x78a   :  { %v1603_v61 = vadd.f32 %v1602_v56, %v3262_v62 }
 0x78c   :  { %2922 = vtanh.f32 %v1603_v61 }
 0x78d   :  { %2924 = vrcp.f32 %v1598_v2 }
 0x796   :  { %v2923_v4 = vpop.eup %2922 }
 0x797   :  { %v1605_v10 = vsub.f32 %v1439_v14, %v2923_v4  ;;  %v2925_v13 = vpop.eup %2924 }
 0x799   :  { %v1606_v15 = vmul.f32 %v2925_v13, %v1605_v10 }
 0x79b   :  { %v1607_v20 = vadd.f32 %v2923_v4, %v1606_v15 }
 0x79d   :  { %1679 = vmatmul.mubr.f32.vlgmr.msra.gmra.mrb[14].mxu0 %v1607_v20  ;;  %2299 = vmatmul.mubr.f32.vlgmr.msra.gmra.mrb[22].mxu1 %v1607_v20 }
 0x870   :  { %v1680_v23 = vpop.f32.mrb[14].mxu0  ;;  %v1751_v24 = vpop.f32.mrb[22].mxu1 }
 0x871   :  { %v2827_v29 = vadd.f32 %v1680_v23, %v3264_v1  ;;  %v1682_v32 = vpop.f32.mrb[15].mxu0  ;;  %v2300_v53 = vpop.f32.mrb[23].mxu1  ;;  %v1769_v28 = vadd.f32 %v3273_v27, %v1751_v24 }
 0x872   :  { %v2828_v62 = vadd.f32 %v1682_v32, %v3267_v11 }
 0x873   :  { %v1815_v16 = vmul.f32 -1.442695, %v2827_v29 }
 0x874   :  { %v1816_v50 = vmul.f32 -1.442695, %v2828_v62 }
 0x875   :  { %2926 = vpow2.f32 %v1815_v16 }
 0x876   :  { %2928 = vpow2.f32 %v1816_v50 }
 0x87f   :  { %v2927_v19 = vpop.eup %2926 }
 0x880   :  { %v1759_v21 = vadd.f32 1.0, %v2927_v19  ;;  %v2929_v22 = vpop.eup %2928 }
 0x881   :  { %v1766_v36 = vadd.f32 1.0, %v2929_v22 }
 0x882   :  { %2930 = vrcp.f32 %v1759_v21 }
 0x88c   :  { %v2931_v30 = vpop.eup %2930 }
 0x88d   :  { %v1770_v31 = vmul.f32 %v2931_v30, %v1769_v28 }
 0x88f   :  { %v1771_v33 = vadd.f32 %v1770_v31, %v3260_v59 }
 0x891   :  { %2932 = vtanh.f32 %v1771_v33 }
 0x892   :  { %2934 = vrcp.f32 %v1766_v36 }
 0x89b   :  { %v2933_v1 = vpop.eup %2932 }
 0x89c   :  { %v1773_v43 = vsub.f32 %v1607_v20, %v2933_v1  ;;  %v2935_v37 = vpop.eup %2934 }
 0x89e   :  { %v1774_v11 = vmul.f32 %v2935_v37, %v1773_v43 }
 0x8a0   :  { %v1775_v57 = vadd.f32 %v2933_v1, %v1774_v11 }
 0x8a2   :  { %1776 = vst [vmem:[#allocation9] sm:$0xff] %v1775_v57 }
 0x8a3   :  { %3013 = shalt.err (!%p3010_p0)
}
 0x8a4   :  { %s3014_s12 = scalar_lea.hbm %s3529_s5, 128 }
 0x8a5   :  { %p3015_p1 = scmp.ne.s32.totalorder %s3529_s5, %s3014_s12  ;;  %p3018_p2 = scmp.lt.u32.totalorder %s3014_s12, %s3529_s5 }
 0x8a7   :  { %p3020_p3 = pnand %p3018_p2, %p3015_p1 }
 0x8a9   :  { %3023 = shalt.err (!%p3020_p3)
}
 0x8aa   :  { %1786 = dma.vmem_to_hbm [thread:$0]  %s1784_s8, 128, %s3529_s5, [#allocation5]  }
 0x8ab   :  { %3028 = dma.done.wait [#allocation5], 128  }
 0x8ac   :  { %3029 = vsyncadd [#allocation5], 4294967168 }
 0x8ad   :  { %1790 = vsyncpa [#allocation4], 1 }
 0x8ae   :  { %1791 = vsyncpa [#allocation7], 1 }
 0x8af   :  { %1792 = vsyncpa [#allocation5], 1 }

</bundles_post_ra>
